<compile_context>
chip_gen: v7x
topology: tpu7x:2x2x1
jax: 0.10.0
libtpu: 0.0.40
codegen_flags: <defaults>
</compile_context>

<pallas_src>
import jax
import jax.numpy as jnp
from jax import lax
from jax.experimental import pallas as pl
from jax.experimental.pallas import tpu as pltpu

B = 2    # documents per kernel invocation (grid axis)
S = 8    # number of pages per document (sequence length)
E = 32   # PageEmbedding.output_size
H = 32   # LSTM hidden_size
L = 4    # len(Label)


def _tagger_kernel(x_ref,                             # (S, E)  page embeddings (one doc)
                   wih_f_ref, whh_f_ref, b_f_ref,     # fwd LSTM: (E,4H), (H,4H), (1,4H)
                   wih_b_ref, whh_b_ref, b_b_ref,     # bwd LSTM: (E,4H), (H,4H), (1,4H)
                   wlin_f_ref, wlin_b_ref, blin_ref,  # linear split: (H,L), (H,L), (1,L)
                   out_ref,                           # (S, L)  softmax output
                   xpf_ref, xpb_ref,                  # VMEM scratch (S,4H): x@W_ih + b
                   rnn_f_ref, rnn_b_ref):             # VMEM scratch (S,H): per-dir h_t
    seq_len = x_ref.shape[0]
    hid = whh_f_ref.shape[0]

    x = x_ref[...]                                     # (S, E), read once

    # Hoisted input projections: one (S,E)@(E,4H) matmul + bias per direction,
    # instead of a (1,E)@(E,4H) matmul + bias add inside every serial step.
    xpf_ref[...] = (jnp.dot(x, wih_f_ref[...], preferred_element_type=jnp.float32)
                    + b_f_ref[...])
    xpb_ref[...] = (jnp.dot(x, wih_b_ref[...], preferred_element_type=jnp.float32)
                    + b_b_ref[...])

    # Hoist recurrent weights into vregs once (8 vregs per direction).
    whh_f = whh_f_ref[...]
    whh_b = whh_b_ref[...]

    def cell(gates, c):
        # Two full-vreg EUP pushes (sigmoid + tanh on the whole (1,4H) gates) plus
        # one tanh(c_new), instead of four sliced (1,H) transcendental calls.
        # PyTorch gate order [i, f, g, o].
        sig = jax.nn.sigmoid(gates)
        th = jnp.tanh(gates)
        i = sig[:, 0 * hid:1 * hid]
        f = sig[:, 1 * hid:2 * hid]
        g = th[:, 2 * hid:3 * hid]
        o = sig[:, 3 * hid:4 * hid]
        c_new = f * c + i * g
        h_new = o * jnp.tanh(c_new)
        return h_new, c_new

    zeros = jnp.zeros((1, hid), jnp.float32)

    # Fused forward/backward recurrence: the two independent chains run inside the
    # same fully-unrolled loop so their MXU and EUP latencies overlap.
    def step(t, carry):
        h_f, c_f, h_b, c_b = carry
        tb = seq_len - 1 - t

        gates_f = (jnp.dot(h_f, whh_f, preferred_element_type=jnp.float32)
                   + xpf_ref[pl.ds(t, 1), :])
        gates_b = (jnp.dot(h_b, whh_b, preferred_element_type=jnp.float32)
                   + xpb_ref[pl.ds(tb, 1), :])

        h_f, c_f = cell(gates_f, c_f)
        h_b, c_b = cell(gates_b, c_b)

        rnn_f_ref[pl.ds(t, 1), :] = h_f
        rnn_b_ref[pl.ds(tb, 1), :] = h_b
        return (h_f, c_f, h_b, c_b)

    lax.fori_loop(0, seq_len, step, (zeros, zeros, zeros, zeros), unroll=True)

    # Linear + softmax(dim=1).  The fwd||bwd concat is replaced by two dots against the
    # split linear weight (avoids the XLU lane-shift + extra VMEM materialization).
    logits = (jnp.dot(rnn_f_ref[...], wlin_f_ref[...], preferred_element_type=jnp.float32)
              + jnp.dot(rnn_b_ref[...], wlin_b_ref[...], preferred_element_type=jnp.float32)
              + blin_ref[...])                                       # (S, L)
    m = jnp.max(logits, axis=1, keepdims=True)
    e = jnp.exp(logits - m)
    out_ref[...] = e / jnp.sum(e, axis=1, keepdims=True)   # exact divide (sums to 1)


def page_sequence_tagger_forward(page_embeddings, params):
    """page_embeddings: (B, S, E) -- B documents of S pages each.
    params = (wih_f, whh_f, b_f, wih_b, whh_b, b_b, wlin, blin)."""
    wih_f, whh_f, b_f, wih_b, whh_b, b_b, wlin, blin = params
    b_docs, s, e = page_embeddings.shape
    h = whh_f.shape[0]
    num_labels = wlin.shape[1]

    # Split the (2H, L) linear weight so the kernel avoids concatenating h_f || h_b.
    wlin_f = wlin[:h, :]
    wlin_b = wlin[h:, :]

    def w_spec(shape):
        nd = len(shape)
        return pl.BlockSpec(shape, lambda i: (0,) * nd)   # weights resident across grid

    return pl.pallas_call(
        _tagger_kernel,
        out_shape=jax.ShapeDtypeStruct((b_docs, s, num_labels), jnp.float32),
        grid=(b_docs,),
        in_specs=[
            pl.BlockSpec((None, s, e), lambda i: (i, 0, 0)),          # embeddings (per doc)
            w_spec((e, 4 * h)), w_spec((h, 4 * h)), w_spec((1, 4 * h)),   # fwd LSTM
            w_spec((e, 4 * h)), w_spec((h, 4 * h)), w_spec((1, 4 * h)),   # bwd LSTM
            w_spec((h, num_labels)), w_spec((h, num_labels)),             # linear (split)
            w_spec((1, num_labels)),                                      # linear bias
        ],
        out_specs=pl.BlockSpec((None, s, num_labels), lambda i: (i, 0, 0)),
        scratch_shapes=[
            pltpu.VMEM((s, 4 * h), jnp.float32),   # xproj fwd
            pltpu.VMEM((s, 4 * h), jnp.float32),   # xproj bwd
            pltpu.VMEM((s, h), jnp.float32),       # fwd hidden states
            pltpu.VMEM((s, h), jnp.float32),       # bwd hidden states
        ],
        compiler_params=pltpu.CompilerParams(
            dimension_semantics=("parallel",)),    # shards docs across v7x's 2 TCs
    )(page_embeddings, wih_f, whh_f, b_f, wih_b, whh_b, b_b, wlin_f, wlin_b, blin)


def _reference_forward(x, params):
    """Pure-JAX reference of the PyTorch forward (per document, then vmapped)."""
    wih_f, whh_f, b_f, wih_b, whh_b, b_b, wlin, blin = params
    hid = whh_f.shape[0]
    hp = lax.Precision.HIGHEST

    def run_dir(x_seq, wih, whh, b):
        def step(carry, x_t):
            h, c = carry
            gates = (jnp.dot(x_t, wih, precision=hp)
                     + jnp.dot(h, whh, precision=hp) + b[0])
            i = jax.nn.sigmoid(gates[0 * hid:1 * hid])
            f = jax.nn.sigmoid(gates[1 * hid:2 * hid])
            g = jnp.tanh(gates[2 * hid:3 * hid])
            o = jax.nn.sigmoid(gates[3 * hid:4 * hid])
            c_new = f * c + i * g
            h_new = o * jnp.tanh(c_new)
            return (h_new, c_new), h_new
        init = (jnp.zeros((hid,), jnp.float32), jnp.zeros((hid,), jnp.float32))
        _, hs = lax.scan(step, init, x_seq)
        return hs

    def per_doc(x_doc):
        hf = run_dir(x_doc, wih_f, whh_f, b_f)
        hb = run_dir(x_doc[::-1], wih_b, whh_b, b_b)[::-1]
        rnn = jnp.concatenate([hf, hb], axis=1)
        logits = jnp.dot(rnn, wlin, precision=hp) + blin[0]
        return jax.nn.softmax(logits, axis=1)

    return jax.vmap(per_doc)(x)


if __name__ == "__main__":
    key = jax.random.PRNGKey(0)
    keys = jax.random.split(key, 9)

    # Deterministic synthetic page embeddings (output of the PageEmbedding submodule).
    x = jax.random.normal(keys[0], (B, S, E), dtype=jnp.float32)

    # Deterministic parameter init, mimicking PyTorch's U(-1/sqrt(H), 1/sqrt(H)).
    k = 1.0 / (H ** 0.5)

    def u(kk, shape):
        return jax.random.uniform(kk, shape, jnp.float32, minval=-k, maxval=k)

    wih_f = u(keys[1], (E, 4 * H))
    whh_f = u(keys[2], (H, 4 * H))
    b_f = u(keys[3], (1, 4 * H))          # b_ih + b_hh folded
    wih_b = u(keys[4], (E, 4 * H))
    whh_b = u(keys[5], (H, 4 * H))
    b_b = u(keys[6], (1, 4 * H))
    wlin = u(keys[7], (2 * H, L))
    blin = u(keys[8], (1, L))

    params = (wih_f, whh_f, b_f, wih_b, whh_b, b_b, wlin, blin)

    out = page_sequence_tagger_forward(x, params)
    jax.block_until_ready(out)

    assert out.shape == (B, S, L), out.shape
    assert jnp.allclose(jnp.sum(out, axis=-1), 1.0, atol=1e-5)

    ref = _reference_forward(x, params)
    max_err = float(jnp.max(jnp.abs(out - ref)))
    assert max_err < 2e-3, f"mismatch vs reference: {max_err}"

    print("KERNEL_OK")
</pallas_src>

<mosaic_0001>
module attributes {stable_mosaic.version = 11 : i64} {
  func.func @_tagger_kernel(%arg0: i32, %arg1: memref<1x8x32xf32, #tpu.memory_space<vmem>>, %arg2: memref<32x128xf32, #tpu.memory_space<vmem>>, %arg3: memref<32x128xf32, #tpu.memory_space<vmem>>, %arg4: memref<1x128xf32, #tpu.memory_space<vmem>>, %arg5: memref<32x128xf32, #tpu.memory_space<vmem>>, %arg6: memref<32x128xf32, #tpu.memory_space<vmem>>, %arg7: memref<1x128xf32, #tpu.memory_space<vmem>>, %arg8: memref<32x4xf32, #tpu.memory_space<vmem>>, %arg9: memref<32x4xf32, #tpu.memory_space<vmem>>, %arg10: memref<1x4xf32, #tpu.memory_space<vmem>>, %arg11: memref<1x8x4xf32, #tpu.memory_space<vmem>>, %arg12: memref<8x128xf32, #tpu.memory_space<vmem>>, %arg13: memref<8x128xf32, #tpu.memory_space<vmem>>, %arg14: memref<8x32xf32, #tpu.memory_space<vmem>>, %arg15: memref<8x32xf32, #tpu.memory_space<vmem>>) attributes {dimension_semantics = [#tpu.dimension_semantics<parallel>], iteration_bounds = array<i64: 2>, scalar_prefetch = 0 : i64, scratch_operands = 4 : i64, tpu.core_type = #tpu.core_type<tc>, window_params = [{transform_indices = @transform_0, window_bounds = array<i64: 1, 8, 32>}, {pipeline_mode = #tpu.pipeline_mode<synchronous>, transform_indices = @transform_1, window_bounds = array<i64: 32, 128>}, {pipeline_mode = #tpu.pipeline_mode<synchronous>, transform_indices = @transform_2, window_bounds = array<i64: 32, 128>}, {pipeline_mode = #tpu.pipeline_mode<synchronous>, transform_indices = @transform_3, window_bounds = array<i64: 1, 128>}, {pipeline_mode = #tpu.pipeline_mode<synchronous>, transform_indices = @transform_4, window_bounds = array<i64: 32, 128>}, {pipeline_mode = #tpu.pipeline_mode<synchronous>, transform_indices = @transform_5, window_bounds = array<i64: 32, 128>}, {pipeline_mode = #tpu.pipeline_mode<synchronous>, transform_indices = @transform_6, window_bounds = array<i64: 1, 128>}, {pipeline_mode = #tpu.pipeline_mode<synchronous>, transform_indices = @transform_7, window_bounds = array<i64: 32, 4>}, {pipeline_mode = #tpu.pipeline_mode<synchronous>, transform_indices = @transform_8, window_bounds = array<i64: 32, 4>}, {pipeline_mode = #tpu.pipeline_mode<synchronous>, transform_indices = @transform_9, window_bounds = array<i64: 1, 4>}, {transform_indices = @transform_10, window_bounds = array<i64: 1, 8, 4>}]} {
    %c0 = arith.constant 0 : index
    %c0_0 = arith.constant 0 : index
    %c0_1 = arith.constant 0 : index
    %0 = vector.load %arg1[%c0, %c0_0, %c0_1] : memref<1x8x32xf32, #tpu.memory_space<vmem>>, vector<1x8x32xf32>
    %1 = vector.shape_cast %0 : vector<1x8x32xf32> to vector<8x32xf32>
    %c0_2 = arith.constant 0 : index
    %c0_3 = arith.constant 0 : index
    %2 = vector.load %arg2[%c0_2, %c0_3] : memref<32x128xf32, #tpu.memory_space<vmem>>, vector<32x128xf32>
    %cst = arith.constant dense<0.000000e+00> : vector<8x128xf32>
    %3 = tpu.matmul %1, %2, %cst {dimension_numbers = #tpu.dot_dimension_numbers<[1], [0], [0], [1], [0, 0, 1, 1], [], []>} : vector<8x32xf32>, vector<32x128xf32>, vector<8x128xf32> -> vector<8x128xf32>
    %c0_4 = arith.constant 0 : index
    %c0_5 = arith.constant 0 : index
    %4 = vector.load %arg4[%c0_4, %c0_5] : memref<1x128xf32, #tpu.memory_space<vmem>>, vector<1x128xf32>
    %5 = vector.broadcast %4 : vector<1x128xf32> to vector<8x128xf32>
    %6 = arith.addf %3, %5 : vector<8x128xf32>
    %c0_6 = arith.constant 0 : index
    %c0_7 = arith.constant 0 : index
    %7 = vector.load %arg12[%c0_6, %c0_7] : memref<8x128xf32, #tpu.memory_space<vmem>>, vector<8x128xf32>
    tpu.vector_store %arg12[%c0_6, %c0_7], %6 {strides = array<i32>} : memref<8x128xf32, #tpu.memory_space<vmem>>, vector<8x128xf32>,
    %c0_8 = arith.constant 0 : index
    %c0_9 = arith.constant 0 : index
    %8 = vector.load %arg5[%c0_8, %c0_9] : memref<32x128xf32, #tpu.memory_space<vmem>>, vector<32x128xf32>
    %cst_10 = arith.constant dense<0.000000e+00> : vector<8x128xf32>
    %9 = tpu.matmul %1, %8, %cst_10 {dimension_numbers = #tpu.dot_dimension_numbers<[1], [0], [0], [1], [0, 0, 1, 1], [], []>} : vector<8x32xf32>, vector<32x128xf32>, vector<8x128xf32> -> vector<8x128xf32>
    %c0_11 = arith.constant 0 : index
    %c0_12 = arith.constant 0 : index
    %10 = vector.load %arg7[%c0_11, %c0_12] : memref<1x128xf32, #tpu.memory_space<vmem>>, vector<1x128xf32>
    %11 = vector.broadcast %10 : vector<1x128xf32> to vector<8x128xf32>
    %12 = arith.addf %9, %11 : vector<8x128xf32>
    %c0_13 = arith.constant 0 : index
    %c0_14 = arith.constant 0 : index
    %13 = vector.load %arg13[%c0_13, %c0_14] : memref<8x128xf32, #tpu.memory_space<vmem>>, vector<8x128xf32>
    tpu.vector_store %arg13[%c0_13, %c0_14], %12 {strides = array<i32>} : memref<8x128xf32, #tpu.memory_space<vmem>>, vector<8x128xf32>,
    %c0_15 = arith.constant 0 : index
    %c0_16 = arith.constant 0 : index
    %14 = vector.load %arg3[%c0_15, %c0_16] : memref<32x128xf32, #tpu.memory_space<vmem>>, vector<32x128xf32>
    %c0_17 = arith.constant 0 : index
    %c0_18 = arith.constant 0 : index
    %15 = vector.load %arg6[%c0_17, %c0_18] : memref<32x128xf32, #tpu.memory_space<vmem>>, vector<32x128xf32>
    %cst_19 = arith.constant 0.000000e+00 : f32
    %16 = vector.broadcast %cst_19 : f32 to vector<1x32xf32>
    %c0_i32 = arith.constant 0 : i32
    %c7_i32 = arith.constant 7 : i32
    %17 = arith.subi %c7_i32, %c0_i32 : i32
    %cst_20 = arith.constant dense<0.000000e+00> : vector<1x128xf32>
    %18 = tpu.matmul %16, %14, %cst_20 {dimension_numbers = #tpu.dot_dimension_numbers<[1], [0], [0], [1], [0, 0, 1, 1], [], []>} : vector<1x32xf32>, vector<32x128xf32>, vector<1x128xf32> -> vector<1x128xf32>
    %19 = arith.index_cast %c0_i32 : i32 to index
    %c0_21 = arith.constant 0 : index
    %20 = vector.load %arg12[%19, %c0_21] : memref<8x128xf32, #tpu.memory_space<vmem>>, vector<1x128xf32>
    %21 = arith.addf %18, %20 : vector<1x128xf32>
    %cst_22 = arith.constant dense<0.000000e+00> : vector<1x128xf32>
    %22 = tpu.matmul %16, %15, %cst_22 {dimension_numbers = #tpu.dot_dimension_numbers<[1], [0], [0], [1], [0, 0, 1, 1], [], []>} : vector<1x32xf32>, vector<32x128xf32>, vector<1x128xf32> -> vector<1x128xf32>
    %23 = arith.index_cast %17 : i32 to index
    %c0_23 = arith.constant 0 : index
    %24 = vector.load %arg13[%23, %c0_23] : memref<8x128xf32, #tpu.memory_space<vmem>>, vector<1x128xf32>
    %25 = arith.addf %22, %24 : vector<1x128xf32>
    %26 = arith.negf %21 : vector<1x128xf32>
    %27 = math.exp %26 : vector<1x128xf32>
    %cst_24 = arith.constant 1.000000e+00 : f32
    %28 = vector.broadcast %cst_24 : f32 to vector<1x128xf32>
    %29 = arith.addf %28, %27 : vector<1x128xf32>
    %30 = arith.divf %28, %29 : vector<1x128xf32>
    %31 = math.tanh %21 : vector<1x128xf32>
    %32 = vector.extract_strided_slice %30 {offsets = [0, 0], sizes = [1, 32], strides = [1, 1]} : vector<1x128xf32> to vector<1x32xf32>
    %33 = vector.extract_strided_slice %30 {offsets = [0, 32], sizes = [1, 32], strides = [1, 1]} : vector<1x128xf32> to vector<1x32xf32>
    %34 = vector.extract_strided_slice %31 {offsets = [0, 64], sizes = [1, 32], strides = [1, 1]} : vector<1x128xf32> to vector<1x32xf32>
    %35 = vector.extract_strided_slice %30 {offsets = [0, 96], sizes = [1, 32], strides = [1, 1]} : vector<1x128xf32> to vector<1x32xf32>
    %36 = arith.mulf %33, %16 : vector<1x32xf32>
    %37 = arith.mulf %32, %34 : vector<1x32xf32>
    %38 = arith.addf %36, %37 : vector<1x32xf32>
    %39 = math.tanh %38 : vector<1x32xf32>
    %40 = arith.mulf %35, %39 : vector<1x32xf32>
    %41 = arith.negf %25 : vector<1x128xf32>
    %42 = math.exp %41 : vector<1x128xf32>
    %cst_25 = arith.constant 1.000000e+00 : f32
    %43 = vector.broadcast %cst_25 : f32 to vector<1x128xf32>
    %44 = arith.addf %43, %42 : vector<1x128xf32>
    %45 = arith.divf %43, %44 : vector<1x128xf32>
    %46 = math.tanh %25 : vector<1x128xf32>
    %47 = vector.extract_strided_slice %45 {offsets = [0, 0], sizes = [1, 32], strides = [1, 1]} : vector<1x128xf32> to vector<1x32xf32>
    %48 = vector.extract_strided_slice %45 {offsets = [0, 32], sizes = [1, 32], strides = [1, 1]} : vector<1x128xf32> to vector<1x32xf32>
    %49 = vector.extract_strided_slice %46 {offsets = [0, 64], sizes = [1, 32], strides = [1, 1]} : vector<1x128xf32> to vector<1x32xf32>
    %50 = vector.extract_strided_slice %45 {offsets = [0, 96], sizes = [1, 32], strides = [1, 1]} : vector<1x128xf32> to vector<1x32xf32>
    %51 = arith.mulf %48, %16 : vector<1x32xf32>
    %52 = arith.mulf %47, %49 : vector<1x32xf32>
    %53 = arith.addf %51, %52 : vector<1x32xf32>
    %54 = math.tanh %53 : vector<1x32xf32>
    %55 = arith.mulf %50, %54 : vector<1x32xf32>
    %56 = arith.index_cast %c0_i32 : i32 to index
    %c0_26 = arith.constant 0 : index
    %57 = vector.load %arg14[%56, %c0_26] : memref<8x32xf32, #tpu.memory_space<vmem>>, vector<1x32xf32>
    tpu.vector_store %arg14[%56, %c0_26], %40 {strides = array<i32>} : memref<8x32xf32, #tpu.memory_space<vmem>>, vector<1x32xf32>,
    %58 = arith.index_cast %17 : i32 to index
    %c0_27 = arith.constant 0 : index
    %59 = vector.load %arg15[%58, %c0_27] : memref<8x32xf32, #tpu.memory_space<vmem>>, vector<1x32xf32>
    tpu.vector_store %arg15[%58, %c0_27], %55 {strides = array<i32>} : memref<8x32xf32, #tpu.memory_space<vmem>>, vector<1x32xf32>,
    %c1_i32 = arith.constant 1 : i32
    %c7_i32_28 = arith.constant 7 : i32
    %60 = arith.subi %c7_i32_28, %c1_i32 : i32
    %cst_29 = arith.constant dense<0.000000e+00> : vector<1x128xf32>
    %61 = tpu.matmul %40, %14, %cst_29 {dimension_numbers = #tpu.dot_dimension_numbers<[1], [0], [0], [1], [0, 0, 1, 1], [], []>} : vector<1x32xf32>, vector<32x128xf32>, vector<1x128xf32> -> vector<1x128xf32>
    %62 = arith.index_cast %c1_i32 : i32 to index
    %c0_30 = arith.constant 0 : index
    %63 = vector.load %arg12[%62, %c0_30] : memref<8x128xf32, #tpu.memory_space<vmem>>, vector<1x128xf32>
    %64 = arith.addf %61, %63 : vector<1x128xf32>
    %cst_31 = arith.constant dense<0.000000e+00> : vector<1x128xf32>
    %65 = tpu.matmul %55, %15, %cst_31 {dimension_numbers = #tpu.dot_dimension_numbers<[1], [0], [0], [1], [0, 0, 1, 1], [], []>} : vector<1x32xf32>, vector<32x128xf32>, vector<1x128xf32> -> vector<1x128xf32>
    %66 = arith.index_cast %60 : i32 to index
    %c0_32 = arith.constant 0 : index
    %67 = vector.load %arg13[%66, %c0_32] : memref<8x128xf32, #tpu.memory_space<vmem>>, vector<1x128xf32>
    %68 = arith.addf %65, %67 : vector<1x128xf32>
    %69 = arith.negf %64 : vector<1x128xf32>
    %70 = math.exp %69 : vector<1x128xf32>
    %cst_33 = arith.constant 1.000000e+00 : f32
    %71 = vector.broadcast %cst_33 : f32 to vector<1x128xf32>
    %72 = arith.addf %71, %70 : vector<1x128xf32>
    %73 = arith.divf %71, %72 : vector<1x128xf32>
    %74 = math.tanh %64 : vector<1x128xf32>
    %75 = vector.extract_strided_slice %73 {offsets = [0, 0], sizes = [1, 32], strides = [1, 1]} : vector<1x128xf32> to vector<1x32xf32>
    %76 = vector.extract_strided_slice %73 {offsets = [0, 32], sizes = [1, 32], strides = [1, 1]} : vector<1x128xf32> to vector<1x32xf32>
    %77 = vector.extract_strided_slice %74 {offsets = [0, 64], sizes = [1, 32], strides = [1, 1]} : vector<1x128xf32> to vector<1x32xf32>
    %78 = vector.extract_strided_slice %73 {offsets = [0, 96], sizes = [1, 32], strides = [1, 1]} : vector<1x128xf32> to vector<1x32xf32>
    %79 = arith.mulf %76, %38 : vector<1x32xf32>
    %80 = arith.mulf %75, %77 : vector<1x32xf32>
    %81 = arith.addf %79, %80 : vector<1x32xf32>
    %82 = math.tanh %81 : vector<1x32xf32>
    %83 = arith.mulf %78, %82 : vector<1x32xf32>
    %84 = arith.negf %68 : vector<1x128xf32>
    %85 = math.exp %84 : vector<1x128xf32>
    %cst_34 = arith.constant 1.000000e+00 : f32
    %86 = vector.broadcast %cst_34 : f32 to vector<1x128xf32>
    %87 = arith.addf %86, %85 : vector<1x128xf32>
    %88 = arith.divf %86, %87 : vector<1x128xf32>
    %89 = math.tanh %68 : vector<1x128xf32>
    %90 = vector.extract_strided_slice %88 {offsets = [0, 0], sizes = [1, 32], strides = [1, 1]} : vector<1x128xf32> to vector<1x32xf32>
    %91 = vector.extract_strided_slice %88 {offsets = [0, 32], sizes = [1, 32], strides = [1, 1]} : vector<1x128xf32> to vector<1x32xf32>
    %92 = vector.extract_strided_slice %89 {offsets = [0, 64], sizes = [1, 32], strides = [1, 1]} : vector<1x128xf32> to vector<1x32xf32>
    %93 = vector.extract_strided_slice %88 {offsets = [0, 96], sizes = [1, 32], strides = [1, 1]} : vector<1x128xf32> to vector<1x32xf32>
    %94 = arith.mulf %91, %53 : vector<1x32xf32>
    %95 = arith.mulf %90, %92 : vector<1x32xf32>
    %96 = arith.addf %94, %95 : vector<1x32xf32>
    %97 = math.tanh %96 : vector<1x32xf32>
    %98 = arith.mulf %93, %97 : vector<1x32xf32>
    %99 = arith.index_cast %c1_i32 : i32 to index
    %c0_35 = arith.constant 0 : index
    %100 = vector.load %arg14[%99, %c0_35] : memref<8x32xf32, #tpu.memory_space<vmem>>, vector<1x32xf32>
    tpu.vector_store %arg14[%99, %c0_35], %83 {strides = array<i32>} : memref<8x32xf32, #tpu.memory_space<vmem>>, vector<1x32xf32>,
    %101 = arith.index_cast %60 : i32 to index
    %c0_36 = arith.constant 0 : index
    %102 = vector.load %arg15[%101, %c0_36] : memref<8x32xf32, #tpu.memory_space<vmem>>, vector<1x32xf32>
    tpu.vector_store %arg15[%101, %c0_36], %98 {strides = array<i32>} : memref<8x32xf32, #tpu.memory_space<vmem>>, vector<1x32xf32>,
    %c2_i32 = arith.constant 2 : i32
    %c7_i32_37 = arith.constant 7 : i32
    %103 = arith.subi %c7_i32_37, %c2_i32 : i32
    %cst_38 = arith.constant dense<0.000000e+00> : vector<1x128xf32>
    %104 = tpu.matmul %83, %14, %cst_38 {dimension_numbers = #tpu.dot_dimension_numbers<[1], [0], [0], [1], [0, 0, 1, 1], [], []>} : vector<1x32xf32>, vector<32x128xf32>, vector<1x128xf32> -> vector<1x128xf32>
    %105 = arith.index_cast %c2_i32 : i32 to index
    %c0_39 = arith.constant 0 : index
    %106 = vector.load %arg12[%105, %c0_39] : memref<8x128xf32, #tpu.memory_space<vmem>>, vector<1x128xf32>
    %107 = arith.addf %104, %106 : vector<1x128xf32>
    %cst_40 = arith.constant dense<0.000000e+00> : vector<1x128xf32>
    %108 = tpu.matmul %98, %15, %cst_40 {dimension_numbers = #tpu.dot_dimension_numbers<[1], [0], [0], [1], [0, 0, 1, 1], [], []>} : vector<1x32xf32>, vector<32x128xf32>, vector<1x128xf32> -> vector<1x128xf32>
    %109 = arith.index_cast %103 : i32 to index
    %c0_41 = arith.constant 0 : index
    %110 = vector.load %arg13[%109, %c0_41] : memref<8x128xf32, #tpu.memory_space<vmem>>, vector<1x128xf32>
    %111 = arith.addf %108, %110 : vector<1x128xf32>
    %112 = arith.negf %107 : vector<1x128xf32>
    %113 = math.exp %112 : vector<1x128xf32>
    %cst_42 = arith.constant 1.000000e+00 : f32
    %114 = vector.broadcast %cst_42 : f32 to vector<1x128xf32>
    %115 = arith.addf %114, %113 : vector<1x128xf32>
    %116 = arith.divf %114, %115 : vector<1x128xf32>
    %117 = math.tanh %107 : vector<1x128xf32>
    %118 = vector.extract_strided_slice %116 {offsets = [0, 0], sizes = [1, 32], strides = [1, 1]} : vector<1x128xf32> to vector<1x32xf32>
    %119 = vector.extract_strided_slice %116 {offsets = [0, 32], sizes = [1, 32], strides = [1, 1]} : vector<1x128xf32> to vector<1x32xf32>
    %120 = vector.extract_strided_slice %117 {offsets = [0, 64], sizes = [1, 32], strides = [1, 1]} : vector<1x128xf32> to vector<1x32xf32>
    %121 = vector.extract_strided_slice %116 {offsets = [0, 96], sizes = [1, 32], strides = [1, 1]} : vector<1x128xf32> to vector<1x32xf32>
    %122 = arith.mulf %119, %81 : vector<1x32xf32>
    %123 = arith.mulf %118, %120 : vector<1x32xf32>
    %124 = arith.addf %122, %123 : vector<1x32xf32>
    %125 = math.tanh %124 : vector<1x32xf32>
    %126 = arith.mulf %121, %125 : vector<1x32xf32>
    %127 = arith.negf %111 : vector<1x128xf32>
    %128 = math.exp %127 : vector<1x128xf32>
    %cst_43 = arith.constant 1.000000e+00 : f32
    %129 = vector.broadcast %cst_43 : f32 to vector<1x128xf32>
    %130 = arith.addf %129, %128 : vector<1x128xf32>
    %131 = arith.divf %129, %130 : vector<1x128xf32>
    %132 = math.tanh %111 : vector<1x128xf32>
    %133 = vector.extract_strided_slice %131 {offsets = [0, 0], sizes = [1, 32], strides = [1, 1]} : vector<1x128xf32> to vector<1x32xf32>
    %134 = vector.extract_strided_slice %131 {offsets = [0, 32], sizes = [1, 32], strides = [1, 1]} : vector<1x128xf32> to vector<1x32xf32>
    %135 = vector.extract_strided_slice %132 {offsets = [0, 64], sizes = [1, 32], strides = [1, 1]} : vector<1x128xf32> to vector<1x32xf32>
    %136 = vector.extract_strided_slice %131 {offsets = [0, 96], sizes = [1, 32], strides = [1, 1]} : vector<1x128xf32> to vector<1x32xf32>
    %137 = arith.mulf %134, %96 : vector<1x32xf32>
    %138 = arith.mulf %133, %135 : vector<1x32xf32>
    %139 = arith.addf %137, %138 : vector<1x32xf32>
    %140 = math.tanh %139 : vector<1x32xf32>
    %141 = arith.mulf %136, %140 : vector<1x32xf32>
    %142 = arith.index_cast %c2_i32 : i32 to index
    %c0_44 = arith.constant 0 : index
    %143 = vector.load %arg14[%142, %c0_44] : memref<8x32xf32, #tpu.memory_space<vmem>>, vector<1x32xf32>
    tpu.vector_store %arg14[%142, %c0_44], %126 {strides = array<i32>} : memref<8x32xf32, #tpu.memory_space<vmem>>, vector<1x32xf32>,
    %144 = arith.index_cast %103 : i32 to index
    %c0_45 = arith.constant 0 : index
    %145 = vector.load %arg15[%144, %c0_45] : memref<8x32xf32, #tpu.memory_space<vmem>>, vector<1x32xf32>
    tpu.vector_store %arg15[%144, %c0_45], %141 {strides = array<i32>} : memref<8x32xf32, #tpu.memory_space<vmem>>, vector<1x32xf32>,
    %c3_i32 = arith.constant 3 : i32
    %c7_i32_46 = arith.constant 7 : i32
    %146 = arith.subi %c7_i32_46, %c3_i32 : i32
    %cst_47 = arith.constant dense<0.000000e+00> : vector<1x128xf32>
    %147 = tpu.matmul %126, %14, %cst_47 {dimension_numbers = #tpu.dot_dimension_numbers<[1], [0], [0], [1], [0, 0, 1, 1], [], []>} : vector<1x32xf32>, vector<32x128xf32>, vector<1x128xf32> -> vector<1x128xf32>
    %148 = arith.index_cast %c3_i32 : i32 to index
    %c0_48 = arith.constant 0 : index
    %149 = vector.load %arg12[%148, %c0_48] : memref<8x128xf32, #tpu.memory_space<vmem>>, vector<1x128xf32>
    %150 = arith.addf %147, %149 : vector<1x128xf32>
    %cst_49 = arith.constant dense<0.000000e+00> : vector<1x128xf32>
    %151 = tpu.matmul %141, %15, %cst_49 {dimension_numbers = #tpu.dot_dimension_numbers<[1], [0], [0], [1], [0, 0, 1, 1], [], []>} : vector<1x32xf32>, vector<32x128xf32>, vector<1x128xf32> -> vector<1x128xf32>
    %152 = arith.index_cast %146 : i32 to index
    %c0_50 = arith.constant 0 : index
    %153 = vector.load %arg13[%152, %c0_50] : memref<8x128xf32, #tpu.memory_space<vmem>>, vector<1x128xf32>
    %154 = arith.addf %151, %153 : vector<1x128xf32>
    %155 = arith.negf %150 : vector<1x128xf32>
    %156 = math.exp %155 : vector<1x128xf32>
    %cst_51 = arith.constant 1.000000e+00 : f32
    %157 = vector.broadcast %cst_51 : f32 to vector<1x128xf32>
    %158 = arith.addf %157, %156 : vector<1x128xf32>
    %159 = arith.divf %157, %158 : vector<1x128xf32>
    %160 = math.tanh %150 : vector<1x128xf32>
    %161 = vector.extract_strided_slice %159 {offsets = [0, 0], sizes = [1, 32], strides = [1, 1]} : vector<1x128xf32> to vector<1x32xf32>
    %162 = vector.extract_strided_slice %159 {offsets = [0, 32], sizes = [1, 32], strides = [1, 1]} : vector<1x128xf32> to vector<1x32xf32>
    %163 = vector.extract_strided_slice %160 {offsets = [0, 64], sizes = [1, 32], strides = [1, 1]} : vector<1x128xf32> to vector<1x32xf32>
    %164 = vector.extract_strided_slice %159 {offsets = [0, 96], sizes = [1, 32], strides = [1, 1]} : vector<1x128xf32> to vector<1x32xf32>
    %165 = arith.mulf %162, %124 : vector<1x32xf32>
    %166 = arith.mulf %161, %163 : vector<1x32xf32>
    %167 = arith.addf %165, %166 : vector<1x32xf32>
    %168 = math.tanh %167 : vector<1x32xf32>
    %169 = arith.mulf %164, %168 : vector<1x32xf32>
    %170 = arith.negf %154 : vector<1x128xf32>
    %171 = math.exp %170 : vector<1x128xf32>
    %cst_52 = arith.constant 1.000000e+00 : f32
    %172 = vector.broadcast %cst_52 : f32 to vector<1x128xf32>
    %173 = arith.addf %172, %171 : vector<1x128xf32>
    %174 = arith.divf %172, %173 : vector<1x128xf32>
    %175 = math.tanh %154 : vector<1x128xf32>
    %176 = vector.extract_strided_slice %174 {offsets = [0, 0], sizes = [1, 32], strides = [1, 1]} : vector<1x128xf32> to vector<1x32xf32>
    %177 = vector.extract_strided_slice %174 {offsets = [0, 32], sizes = [1, 32], strides = [1, 1]} : vector<1x128xf32> to vector<1x32xf32>
    %178 = vector.extract_strided_slice %175 {offsets = [0, 64], sizes = [1, 32], strides = [1, 1]} : vector<1x128xf32> to vector<1x32xf32>
    %179 = vector.extract_strided_slice %174 {offsets = [0, 96], sizes = [1, 32], strides = [1, 1]} : vector<1x128xf32> to vector<1x32xf32>
    %180 = arith.mulf %177, %139 : vector<1x32xf32>
    %181 = arith.mulf %176, %178 : vector<1x32xf32>
    %182 = arith.addf %180, %181 : vector<1x32xf32>
    %183 = math.tanh %182 : vector<1x32xf32>
    %184 = arith.mulf %179, %183 : vector<1x32xf32>
    %185 = arith.index_cast %c3_i32 : i32 to index
    %c0_53 = arith.constant 0 : index
    %186 = vector.load %arg14[%185, %c0_53] : memref<8x32xf32, #tpu.memory_space<vmem>>, vector<1x32xf32>
    tpu.vector_store %arg14[%185, %c0_53], %169 {strides = array<i32>} : memref<8x32xf32, #tpu.memory_space<vmem>>, vector<1x32xf32>,
    %187 = arith.index_cast %146 : i32 to index
    %c0_54 = arith.constant 0 : index
    %188 = vector.load %arg15[%187, %c0_54] : memref<8x32xf32, #tpu.memory_space<vmem>>, vector<1x32xf32>
    tpu.vector_store %arg15[%187, %c0_54], %184 {strides = array<i32>} : memref<8x32xf32, #tpu.memory_space<vmem>>, vector<1x32xf32>,
    %c4_i32 = arith.constant 4 : i32
    %c7_i32_55 = arith.constant 7 : i32
    %189 = arith.subi %c7_i32_55, %c4_i32 : i32
    %cst_56 = arith.constant dense<0.000000e+00> : vector<1x128xf32>
    %190 = tpu.matmul %169, %14, %cst_56 {dimension_numbers = #tpu.dot_dimension_numbers<[1], [0], [0], [1], [0, 0, 1, 1], [], []>} : vector<1x32xf32>, vector<32x128xf32>, vector<1x128xf32> -> vector<1x128xf32>
    %191 = arith.index_cast %c4_i32 : i32 to index
    %c0_57 = arith.constant 0 : index
    %192 = vector.load %arg12[%191, %c0_57] : memref<8x128xf32, #tpu.memory_space<vmem>>, vector<1x128xf32>
    %193 = arith.addf %190, %192 : vector<1x128xf32>
    %cst_58 = arith.constant dense<0.000000e+00> : vector<1x128xf32>
    %194 = tpu.matmul %184, %15, %cst_58 {dimension_numbers = #tpu.dot_dimension_numbers<[1], [0], [0], [1], [0, 0, 1, 1], [], []>} : vector<1x32xf32>, vector<32x128xf32>, vector<1x128xf32> -> vector<1x128xf32>
    %195 = arith.index_cast %189 : i32 to index
    %c0_59 = arith.constant 0 : index
    %196 = vector.load %arg13[%195, %c0_59] : memref<8x128xf32, #tpu.memory_space<vmem>>, vector<1x128xf32>
    %197 = arith.addf %194, %196 : vector<1x128xf32>
    %198 = arith.negf %193 : vector<1x128xf32>
    %199 = math.exp %198 : vector<1x128xf32>
    %cst_60 = arith.constant 1.000000e+00 : f32
    %200 = vector.broadcast %cst_60 : f32 to vector<1x128xf32>
    %201 = arith.addf %200, %199 : vector<1x128xf32>
    %202 = arith.divf %200, %201 : vector<1x128xf32>
    %203 = math.tanh %193 : vector<1x128xf32>
    %204 = vector.extract_strided_slice %202 {offsets = [0, 0], sizes = [1, 32], strides = [1, 1]} : vector<1x128xf32> to vector<1x32xf32>
    %205 = vector.extract_strided_slice %202 {offsets = [0, 32], sizes = [1, 32], strides = [1, 1]} : vector<1x128xf32> to vector<1x32xf32>
    %206 = vector.extract_strided_slice %203 {offsets = [0, 64], sizes = [1, 32], strides = [1, 1]} : vector<1x128xf32> to vector<1x32xf32>
    %207 = vector.extract_strided_slice %202 {offsets = [0, 96], sizes = [1, 32], strides = [1, 1]} : vector<1x128xf32> to vector<1x32xf32>
    %208 = arith.mulf %205, %167 : vector<1x32xf32>
    %209 = arith.mulf %204, %206 : vector<1x32xf32>
    %210 = arith.addf %208, %209 : vector<1x32xf32>
    %211 = math.tanh %210 : vector<1x32xf32>
    %212 = arith.mulf %207, %211 : vector<1x32xf32>
    %213 = arith.negf %197 : vector<1x128xf32>
    %214 = math.exp %213 : vector<1x128xf32>
    %cst_61 = arith.constant 1.000000e+00 : f32
    %215 = vector.broadcast %cst_61 : f32 to vector<1x128xf32>
    %216 = arith.addf %215, %214 : vector<1x128xf32>
    %217 = arith.divf %215, %216 : vector<1x128xf32>
    %218 = math.tanh %197 : vector<1x128xf32>
    %219 = vector.extract_strided_slice %217 {offsets = [0, 0], sizes = [1, 32], strides = [1, 1]} : vector<1x128xf32> to vector<1x32xf32>
    %220 = vector.extract_strided_slice %217 {offsets = [0, 32], sizes = [1, 32], strides = [1, 1]} : vector<1x128xf32> to vector<1x32xf32>
    %221 = vector.extract_strided_slice %218 {offsets = [0, 64], sizes = [1, 32], strides = [1, 1]} : vector<1x128xf32> to vector<1x32xf32>
    %222 = vector.extract_strided_slice %217 {offsets = [0, 96], sizes = [1, 32], strides = [1, 1]} : vector<1x128xf32> to vector<1x32xf32>
    %223 = arith.mulf %220, %182 : vector<1x32xf32>
    %224 = arith.mulf %219, %221 : vector<1x32xf32>
    %225 = arith.addf %223, %224 : vector<1x32xf32>
    %226 = math.tanh %225 : vector<1x32xf32>
    %227 = arith.mulf %222, %226 : vector<1x32xf32>
    %228 = arith.index_cast %c4_i32 : i32 to index
    %c0_62 = arith.constant 0 : index
    %229 = vector.load %arg14[%228, %c0_62] : memref<8x32xf32, #tpu.memory_space<vmem>>, vector<1x32xf32>
    tpu.vector_store %arg14[%228, %c0_62], %212 {strides = array<i32>} : memref<8x32xf32, #tpu.memory_space<vmem>>, vector<1x32xf32>,
    %230 = arith.index_cast %189 : i32 to index
    %c0_63 = arith.constant 0 : index
    %231 = vector.load %arg15[%230, %c0_63] : memref<8x32xf32, #tpu.memory_space<vmem>>, vector<1x32xf32>
    tpu.vector_store %arg15[%230, %c0_63], %227 {strides = array<i32>} : memref<8x32xf32, #tpu.memory_space<vmem>>, vector<1x32xf32>,
    %c5_i32 = arith.constant 5 : i32
    %c7_i32_64 = arith.constant 7 : i32
    %232 = arith.subi %c7_i32_64, %c5_i32 : i32
    %cst_65 = arith.constant dense<0.000000e+00> : vector<1x128xf32>
    %233 = tpu.matmul %212, %14, %cst_65 {dimension_numbers = #tpu.dot_dimension_numbers<[1], [0], [0], [1], [0, 0, 1, 1], [], []>} : vector<1x32xf32>, vector<32x128xf32>, vector<1x128xf32> -> vector<1x128xf32>
    %234 = arith.index_cast %c5_i32 : i32 to index
    %c0_66 = arith.constant 0 : index
    %235 = vector.load %arg12[%234, %c0_66] : memref<8x128xf32, #tpu.memory_space<vmem>>, vector<1x128xf32>
    %236 = arith.addf %233, %235 : vector<1x128xf32>
    %cst_67 = arith.constant dense<0.000000e+00> : vector<1x128xf32>
    %237 = tpu.matmul %227, %15, %cst_67 {dimension_numbers = #tpu.dot_dimension_numbers<[1], [0], [0], [1], [0, 0, 1, 1], [], []>} : vector<1x32xf32>, vector<32x128xf32>, vector<1x128xf32> -> vector<1x128xf32>
    %238 = arith.index_cast %232 : i32 to index
    %c0_68 = arith.constant 0 : index
    %239 = vector.load %arg13[%238, %c0_68] : memref<8x128xf32, #tpu.memory_space<vmem>>, vector<1x128xf32>
    %240 = arith.addf %237, %239 : vector<1x128xf32>
    %241 = arith.negf %236 : vector<1x128xf32>
    %242 = math.exp %241 : vector<1x128xf32>
    %cst_69 = arith.constant 1.000000e+00 : f32
    %243 = vector.broadcast %cst_69 : f32 to vector<1x128xf32>
    %244 = arith.addf %243, %242 : vector<1x128xf32>
    %245 = arith.divf %243, %244 : vector<1x128xf32>
    %246 = math.tanh %236 : vector<1x128xf32>
    %247 = vector.extract_strided_slice %245 {offsets = [0, 0], sizes = [1, 32], strides = [1, 1]} : vector<1x128xf32> to vector<1x32xf32>
    %248 = vector.extract_strided_slice %245 {offsets = [0, 32], sizes = [1, 32], strides = [1, 1]} : vector<1x128xf32> to vector<1x32xf32>
    %249 = vector.extract_strided_slice %246 {offsets = [0, 64], sizes = [1, 32], strides = [1, 1]} : vector<1x128xf32> to vector<1x32xf32>
    %250 = vector.extract_strided_slice %245 {offsets = [0, 96], sizes = [1, 32], strides = [1, 1]} : vector<1x128xf32> to vector<1x32xf32>
    %251 = arith.mulf %248, %210 : vector<1x32xf32>
    %252 = arith.mulf %247, %249 : vector<1x32xf32>
    %253 = arith.addf %251, %252 : vector<1x32xf32>
    %254 = math.tanh %253 : vector<1x32xf32>
    %255 = arith.mulf %250, %254 : vector<1x32xf32>
    %256 = arith.negf %240 : vector<1x128xf32>
    %257 = math.exp %256 : vector<1x128xf32>
    %cst_70 = arith.constant 1.000000e+00 : f32
    %258 = vector.broadcast %cst_70 : f32 to vector<1x128xf32>
    %259 = arith.addf %258, %257 : vector<1x128xf32>
    %260 = arith.divf %258, %259 : vector<1x128xf32>
    %261 = math.tanh %240 : vector<1x128xf32>
    %262 = vector.extract_strided_slice %260 {offsets = [0, 0], sizes = [1, 32], strides = [1, 1]} : vector<1x128xf32> to vector<1x32xf32>
    %263 = vector.extract_strided_slice %260 {offsets = [0, 32], sizes = [1, 32], strides = [1, 1]} : vector<1x128xf32> to vector<1x32xf32>
    %264 = vector.extract_strided_slice %261 {offsets = [0, 64], sizes = [1, 32], strides = [1, 1]} : vector<1x128xf32> to vector<1x32xf32>
    %265 = vector.extract_strided_slice %260 {offsets = [0, 96], sizes = [1, 32], strides = [1, 1]} : vector<1x128xf32> to vector<1x32xf32>
    %266 = arith.mulf %263, %225 : vector<1x32xf32>
    %267 = arith.mulf %262, %264 : vector<1x32xf32>
    %268 = arith.addf %266, %267 : vector<1x32xf32>
    %269 = math.tanh %268 : vector<1x32xf32>
    %270 = arith.mulf %265, %269 : vector<1x32xf32>
    %271 = arith.index_cast %c5_i32 : i32 to index
    %c0_71 = arith.constant 0 : index
    %272 = vector.load %arg14[%271, %c0_71] : memref<8x32xf32, #tpu.memory_space<vmem>>, vector<1x32xf32>
    tpu.vector_store %arg14[%271, %c0_71], %255 {strides = array<i32>} : memref<8x32xf32, #tpu.memory_space<vmem>>, vector<1x32xf32>,
    %273 = arith.index_cast %232 : i32 to index
    %c0_72 = arith.constant 0 : index
    %274 = vector.load %arg15[%273, %c0_72] : memref<8x32xf32, #tpu.memory_space<vmem>>, vector<1x32xf32>
    tpu.vector_store %arg15[%273, %c0_72], %270 {strides = array<i32>} : memref<8x32xf32, #tpu.memory_space<vmem>>, vector<1x32xf32>,
    %c6_i32 = arith.constant 6 : i32
    %c7_i32_73 = arith.constant 7 : i32
    %275 = arith.subi %c7_i32_73, %c6_i32 : i32
    %cst_74 = arith.constant dense<0.000000e+00> : vector<1x128xf32>
    %276 = tpu.matmul %255, %14, %cst_74 {dimension_numbers = #tpu.dot_dimension_numbers<[1], [0], [0], [1], [0, 0, 1, 1], [], []>} : vector<1x32xf32>, vector<32x128xf32>, vector<1x128xf32> -> vector<1x128xf32>
    %277 = arith.index_cast %c6_i32 : i32 to index
    %c0_75 = arith.constant 0 : index
    %278 = vector.load %arg12[%277, %c0_75] : memref<8x128xf32, #tpu.memory_space<vmem>>, vector<1x128xf32>
    %279 = arith.addf %276, %278 : vector<1x128xf32>
    %cst_76 = arith.constant dense<0.000000e+00> : vector<1x128xf32>
    %280 = tpu.matmul %270, %15, %cst_76 {dimension_numbers = #tpu.dot_dimension_numbers<[1], [0], [0], [1], [0, 0, 1, 1], [], []>} : vector<1x32xf32>, vector<32x128xf32>, vector<1x128xf32> -> vector<1x128xf32>
    %281 = arith.index_cast %275 : i32 to index
    %c0_77 = arith.constant 0 : index
    %282 = vector.load %arg13[%281, %c0_77] : memref<8x128xf32, #tpu.memory_space<vmem>>, vector<1x128xf32>
    %283 = arith.addf %280, %282 : vector<1x128xf32>
    %284 = arith.negf %279 : vector<1x128xf32>
    %285 = math.exp %284 : vector<1x128xf32>
    %cst_78 = arith.constant 1.000000e+00 : f32
    %286 = vector.broadcast %cst_78 : f32 to vector<1x128xf32>
    %287 = arith.addf %286, %285 : vector<1x128xf32>
    %288 = arith.divf %286, %287 : vector<1x128xf32>
    %289 = math.tanh %279 : vector<1x128xf32>
    %290 = vector.extract_strided_slice %288 {offsets = [0, 0], sizes = [1, 32], strides = [1, 1]} : vector<1x128xf32> to vector<1x32xf32>
    %291 = vector.extract_strided_slice %288 {offsets = [0, 32], sizes = [1, 32], strides = [1, 1]} : vector<1x128xf32> to vector<1x32xf32>
    %292 = vector.extract_strided_slice %289 {offsets = [0, 64], sizes = [1, 32], strides = [1, 1]} : vector<1x128xf32> to vector<1x32xf32>
    %293 = vector.extract_strided_slice %288 {offsets = [0, 96], sizes = [1, 32], strides = [1, 1]} : vector<1x128xf32> to vector<1x32xf32>
    %294 = arith.mulf %291, %253 : vector<1x32xf32>
    %295 = arith.mulf %290, %292 : vector<1x32xf32>
    %296 = arith.addf %294, %295 : vector<1x32xf32>
    %297 = math.tanh %296 : vector<1x32xf32>
    %298 = arith.mulf %293, %297 : vector<1x32xf32>
    %299 = arith.negf %283 : vector<1x128xf32>
    %300 = math.exp %299 : vector<1x128xf32>
    %cst_79 = arith.constant 1.000000e+00 : f32
    %301 = vector.broadcast %cst_79 : f32 to vector<1x128xf32>
    %302 = arith.addf %301, %300 : vector<1x128xf32>
    %303 = arith.divf %301, %302 : vector<1x128xf32>
    %304 = math.tanh %283 : vector<1x128xf32>
    %305 = vector.extract_strided_slice %303 {offsets = [0, 0], sizes = [1, 32], strides = [1, 1]} : vector<1x128xf32> to vector<1x32xf32>
    %306 = vector.extract_strided_slice %303 {offsets = [0, 32], sizes = [1, 32], strides = [1, 1]} : vector<1x128xf32> to vector<1x32xf32>
    %307 = vector.extract_strided_slice %304 {offsets = [0, 64], sizes = [1, 32], strides = [1, 1]} : vector<1x128xf32> to vector<1x32xf32>
    %308 = vector.extract_strided_slice %303 {offsets = [0, 96], sizes = [1, 32], strides = [1, 1]} : vector<1x128xf32> to vector<1x32xf32>
    %309 = arith.mulf %306, %268 : vector<1x32xf32>
    %310 = arith.mulf %305, %307 : vector<1x32xf32>
    %311 = arith.addf %309, %310 : vector<1x32xf32>
    %312 = math.tanh %311 : vector<1x32xf32>
    %313 = arith.mulf %308, %312 : vector<1x32xf32>
    %314 = arith.index_cast %c6_i32 : i32 to index
    %c0_80 = arith.constant 0 : index
    %315 = vector.load %arg14[%314, %c0_80] : memref<8x32xf32, #tpu.memory_space<vmem>>, vector<1x32xf32>
    tpu.vector_store %arg14[%314, %c0_80], %298 {strides = array<i32>} : memref<8x32xf32, #tpu.memory_space<vmem>>, vector<1x32xf32>,
    %316 = arith.index_cast %275 : i32 to index
    %c0_81 = arith.constant 0 : index
    %317 = vector.load %arg15[%316, %c0_81] : memref<8x32xf32, #tpu.memory_space<vmem>>, vector<1x32xf32>
    tpu.vector_store %arg15[%316, %c0_81], %313 {strides = array<i32>} : memref<8x32xf32, #tpu.memory_space<vmem>>, vector<1x32xf32>,
    %c7_i32_82 = arith.constant 7 : i32
    %c7_i32_83 = arith.constant 7 : i32
    %318 = arith.subi %c7_i32_83, %c7_i32_82 : i32
    %cst_84 = arith.constant dense<0.000000e+00> : vector<1x128xf32>
    %319 = tpu.matmul %298, %14, %cst_84 {dimension_numbers = #tpu.dot_dimension_numbers<[1], [0], [0], [1], [0, 0, 1, 1], [], []>} : vector<1x32xf32>, vector<32x128xf32>, vector<1x128xf32> -> vector<1x128xf32>
    %320 = arith.index_cast %c7_i32_82 : i32 to index
    %c0_85 = arith.constant 0 : index
    %321 = vector.load %arg12[%320, %c0_85] : memref<8x128xf32, #tpu.memory_space<vmem>>, vector<1x128xf32>
    %322 = arith.addf %319, %321 : vector<1x128xf32>
    %cst_86 = arith.constant dense<0.000000e+00> : vector<1x128xf32>
    %323 = tpu.matmul %313, %15, %cst_86 {dimension_numbers = #tpu.dot_dimension_numbers<[1], [0], [0], [1], [0, 0, 1, 1], [], []>} : vector<1x32xf32>, vector<32x128xf32>, vector<1x128xf32> -> vector<1x128xf32>
    %324 = arith.index_cast %318 : i32 to index
    %c0_87 = arith.constant 0 : index
    %325 = vector.load %arg13[%324, %c0_87] : memref<8x128xf32, #tpu.memory_space<vmem>>, vector<1x128xf32>
    %326 = arith.addf %323, %325 : vector<1x128xf32>
    %327 = arith.negf %322 : vector<1x128xf32>
    %328 = math.exp %327 : vector<1x128xf32>
    %cst_88 = arith.constant 1.000000e+00 : f32
    %329 = vector.broadcast %cst_88 : f32 to vector<1x128xf32>
    %330 = arith.addf %329, %328 : vector<1x128xf32>
    %331 = arith.divf %329, %330 : vector<1x128xf32>
    %332 = math.tanh %322 : vector<1x128xf32>
    %333 = vector.extract_strided_slice %331 {offsets = [0, 0], sizes = [1, 32], strides = [1, 1]} : vector<1x128xf32> to vector<1x32xf32>
    %334 = vector.extract_strided_slice %331 {offsets = [0, 32], sizes = [1, 32], strides = [1, 1]} : vector<1x128xf32> to vector<1x32xf32>
    %335 = vector.extract_strided_slice %332 {offsets = [0, 64], sizes = [1, 32], strides = [1, 1]} : vector<1x128xf32> to vector<1x32xf32>
    %336 = vector.extract_strided_slice %331 {offsets = [0, 96], sizes = [1, 32], strides = [1, 1]} : vector<1x128xf32> to vector<1x32xf32>
    %337 = arith.mulf %334, %296 : vector<1x32xf32>
    %338 = arith.mulf %333, %335 : vector<1x32xf32>
    %339 = arith.addf %337, %338 : vector<1x32xf32>
    %340 = math.tanh %339 : vector<1x32xf32>
    %341 = arith.mulf %336, %340 : vector<1x32xf32>
    %342 = arith.negf %326 : vector<1x128xf32>
    %343 = math.exp %342 : vector<1x128xf32>
    %cst_89 = arith.constant 1.000000e+00 : f32
    %344 = vector.broadcast %cst_89 : f32 to vector<1x128xf32>
    %345 = arith.addf %344, %343 : vector<1x128xf32>
    %346 = arith.divf %344, %345 : vector<1x128xf32>
    %347 = math.tanh %326 : vector<1x128xf32>
    %348 = vector.extract_strided_slice %346 {offsets = [0, 0], sizes = [1, 32], strides = [1, 1]} : vector<1x128xf32> to vector<1x32xf32>
    %349 = vector.extract_strided_slice %346 {offsets = [0, 32], sizes = [1, 32], strides = [1, 1]} : vector<1x128xf32> to vector<1x32xf32>
    %350 = vector.extract_strided_slice %347 {offsets = [0, 64], sizes = [1, 32], strides = [1, 1]} : vector<1x128xf32> to vector<1x32xf32>
    %351 = vector.extract_strided_slice %346 {offsets = [0, 96], sizes = [1, 32], strides = [1, 1]} : vector<1x128xf32> to vector<1x32xf32>
    %352 = arith.mulf %349, %311 : vector<1x32xf32>
    %353 = arith.mulf %348, %350 : vector<1x32xf32>
    %354 = arith.addf %352, %353 : vector<1x32xf32>
    %355 = math.tanh %354 : vector<1x32xf32>
    %356 = arith.mulf %351, %355 : vector<1x32xf32>
    %357 = arith.index_cast %c7_i32_82 : i32 to index
    %c0_90 = arith.constant 0 : index
    %358 = vector.load %arg14[%357, %c0_90] : memref<8x32xf32, #tpu.memory_space<vmem>>, vector<1x32xf32>
    tpu.vector_store %arg14[%357, %c0_90], %341 {strides = array<i32>} : memref<8x32xf32, #tpu.memory_space<vmem>>, vector<1x32xf32>,
    %359 = arith.index_cast %318 : i32 to index
    %c0_91 = arith.constant 0 : index
    %360 = vector.load %arg15[%359, %c0_91] : memref<8x32xf32, #tpu.memory_space<vmem>>, vector<1x32xf32>
    tpu.vector_store %arg15[%359, %c0_91], %356 {strides = array<i32>} : memref<8x32xf32, #tpu.memory_space<vmem>>, vector<1x32xf32>,
    %c8_i32 = arith.constant 8 : i32
    %c0_92 = arith.constant 0 : index
    %c0_93 = arith.constant 0 : index
    %361 = vector.load %arg14[%c0_92, %c0_93] : memref<8x32xf32, #tpu.memory_space<vmem>>, vector<8x32xf32>
    %c0_94 = arith.constant 0 : index
    %c0_95 = arith.constant 0 : index
    %362 = vector.load %arg8[%c0_94, %c0_95] : memref<32x4xf32, #tpu.memory_space<vmem>>, vector<32x4xf32>
    %cst_96 = arith.constant dense<0.000000e+00> : vector<8x4xf32>
    %363 = tpu.matmul %361, %362, %cst_96 {dimension_numbers = #tpu.dot_dimension_numbers<[1], [0], [0], [1], [0, 0, 1, 1], [], []>} : vector<8x32xf32>, vector<32x4xf32>, vector<8x4xf32> -> vector<8x4xf32>
    %c0_97 = arith.constant 0 : index
    %c0_98 = arith.constant 0 : index
    %364 = vector.load %arg15[%c0_97, %c0_98] : memref<8x32xf32, #tpu.memory_space<vmem>>, vector<8x32xf32>
    %c0_99 = arith.constant 0 : index
    %c0_100 = arith.constant 0 : index
    %365 = vector.load %arg9[%c0_99, %c0_100] : memref<32x4xf32, #tpu.memory_space<vmem>>, vector<32x4xf32>
    %cst_101 = arith.constant dense<0.000000e+00> : vector<8x4xf32>
    %366 = tpu.matmul %364, %365, %cst_101 {dimension_numbers = #tpu.dot_dimension_numbers<[1], [0], [0], [1], [0, 0, 1, 1], [], []>} : vector<8x32xf32>, vector<32x4xf32>, vector<8x4xf32> -> vector<8x4xf32>
    %367 = arith.addf %363, %366 : vector<8x4xf32>
    %c0_102 = arith.constant 0 : index
    %c0_103 = arith.constant 0 : index
    %368 = vector.load %arg10[%c0_102, %c0_103] : memref<1x4xf32, #tpu.memory_space<vmem>>, vector<1x4xf32>
    %369 = vector.broadcast %368 : vector<1x4xf32> to vector<8x4xf32>
    %370 = arith.addf %367, %369 : vector<8x4xf32>
    %cst_104 = arith.constant dense<0xFF800000> : vector<8xf32>
    %371 = vector.multi_reduction <maximumf>, %370, %cst_104 [1] : vector<8x4xf32> to vector<8xf32>
    %372 = vector.shape_cast %371 : vector<8xf32> to vector<8x1xf32>
    %373 = vector.broadcast %372 : vector<8x1xf32> to vector<8x4xf32>
    %374 = arith.subf %370, %373 : vector<8x4xf32>
    %375 = math.exp %374 : vector<8x4xf32>
    %cst_105 = arith.constant dense<0.000000e+00> : vector<8xf32>
    %376 = vector.multi_reduction <add>, %375, %cst_105 [1] : vector<8x4xf32> to vector<8xf32>
    %377 = vector.shape_cast %376 : vector<8xf32> to vector<8x1xf32>
    %378 = vector.broadcast %377 : vector<8x1xf32> to vector<8x4xf32>
    %379 = arith.divf %375, %378 : vector<8x4xf32>
    %c0_106 = arith.constant 0 : index
    %c0_107 = arith.constant 0 : index
    %c0_108 = arith.constant 0 : index
    %380 = vector.load %arg11[%c0_106, %c0_107, %c0_108] : memref<1x8x4xf32, #tpu.memory_space<vmem>>, vector<1x8x4xf32>
    %381 = vector.shape_cast %380 : vector<1x8x4xf32> to vector<8x4xf32>
    %382 = vector.shape_cast %379 : vector<8x4xf32> to vector<1x8x4xf32>
    tpu.vector_store %arg11[%c0_106, %c0_107, %c0_108], %382 {strides = array<i32>} : memref<1x8x4xf32, #tpu.memory_space<vmem>>, vector<1x8x4xf32>,
    return
  }
  func.func @transform_0(%arg0: i32) -> (i32, i32, i32) {
    %c0_i32 = arith.constant 0 : i32
    %c0_i32_0 = arith.constant 0 : i32
    %c0_i32_1 = arith.constant 0 : i32
    return %arg0, %c0_i32, %c0_i32_0 : i32, i32, i32
  }
  func.func @transform_1(%arg0: i32) -> (i32, i32) {
    %c0_i32 = arith.constant 0 : i32
    %c0_i32_0 = arith.constant 0 : i32
    %c0_i32_1 = arith.constant 0 : i32
    return %c0_i32, %c0_i32_0 : i32, i32
  }
  func.func @transform_2(%arg0: i32) -> (i32, i32) {
    %c0_i32 = arith.constant 0 : i32
    %c0_i32_0 = arith.constant 0 : i32
    %c0_i32_1 = arith.constant 0 : i32
    return %c0_i32, %c0_i32_0 : i32, i32
  }
  func.func @transform_3(%arg0: i32) -> (i32, i32) {
    %c0_i32 = arith.constant 0 : i32
    %c0_i32_0 = arith.constant 0 : i32
    %c0_i32_1 = arith.constant 0 : i32
    return %c0_i32, %c0_i32_0 : i32, i32
  }
  func.func @transform_4(%arg0: i32) -> (i32, i32) {
    %c0_i32 = arith.constant 0 : i32
    %c0_i32_0 = arith.constant 0 : i32
    %c0_i32_1 = arith.constant 0 : i32
    return %c0_i32, %c0_i32_0 : i32, i32
  }
  func.func @transform_5(%arg0: i32) -> (i32, i32) {
    %c0_i32 = arith.constant 0 : i32
    %c0_i32_0 = arith.constant 0 : i32
    %c0_i32_1 = arith.constant 0 : i32
    return %c0_i32, %c0_i32_0 : i32, i32
  }
  func.func @transform_6(%arg0: i32) -> (i32, i32) {
    %c0_i32 = arith.constant 0 : i32
    %c0_i32_0 = arith.constant 0 : i32
    %c0_i32_1 = arith.constant 0 : i32
    return %c0_i32, %c0_i32_0 : i32, i32
  }
  func.func @transform_7(%arg0: i32) -> (i32, i32) {
    %c0_i32 = arith.constant 0 : i32
    %c0_i32_0 = arith.constant 0 : i32
    %c0_i32_1 = arith.constant 0 : i32
    return %c0_i32, %c0_i32_0 : i32, i32
  }
  func.func @transform_8(%arg0: i32) -> (i32, i32) {
    %c0_i32 = arith.constant 0 : i32
    %c0_i32_0 = arith.constant 0 : i32
    %c0_i32_1 = arith.constant 0 : i32
    return %c0_i32, %c0_i32_0 : i32, i32
  }
  func.func @transform_9(%arg0: i32) -> (i32, i32) {
    %c0_i32 = arith.constant 0 : i32
    %c0_i32_0 = arith.constant 0 : i32
    %c0_i32_1 = arith.constant 0 : i32
    return %c0_i32, %c0_i32_0 : i32, i32
  }
  func.func @transform_10(%arg0: i32) -> (i32, i32, i32) {
    %c0_i32 = arith.constant 0 : i32
    %c0_i32_0 = arith.constant 0 : i32
    %c0_i32_1 = arith.constant 0 : i32
    return %arg0, %c0_i32, %c0_i32_0 : i32, i32, i32
  }
}

</mosaic_0001>

<bundles_post_ra>
// kernel: tpu_custom_call.1
= control target key start
LH: loop header
LB: loop body
LE: loop exit
PB: predicated region body
PF: predicated region fallthrough
CT: control target
= control target key end

     0   :  { %15 = vsyncpa [#allocation7], 0  ;;  %s3860_s0 = inlined_call_operand.hbm [shape: f32[2,8,32], index: 0, kind: input, shape index: {}]   ;;  %s3861_s1 = inlined_call_operand.vmem [shape: f32[32,128], index: 1, kind: input, shape index: {}]   ;;  %s3862_s2 = inlined_call_operand.vmem [shape: f32[32,128], index: 2, kind: input, shape index: {}]   ;;  %s3863_s3 = inlined_call_operand.vmem [shape: f32[1,128], index: 3, kind: input, shape index: {}]   ;;  %s3864_s4 = inlined_call_operand.hbm [shape: f32[32,128], index: 4, kind: input, shape index: {}]   ;;  %s3865_s5 = inlined_call_operand.hbm [shape: f32[32,128], index: 5, kind: input, shape index: {}]   ;;  %s3866_s6 = inlined_call_operand.vmem [shape: f32[1,128], index: 6, kind: input, shape index: {}]   ;;  %s3867_s7 = inlined_call_operand.vmem [shape: f32[32,4], index: 7, kind: input, shape index: {}]   ;;  %s3868_s8 = inlined_call_operand.vmem [shape: f32[32,4], index: 8, kind: input, shape index: {}]   ;;  %s3869_s9 = inlined_call_operand.vmem [shape: f32[1,4], index: 9, kind: input, shape index: {}]   ;;  %s3870_s10 = inlined_call_operand.vmem [shape: f32[2,8,4], index: 10, kind: output, shape index: {}]  }
   0x1   :  { %17 = vsyncpa [#allocation7 + $0x1], 0 }
   0x2   :  { %18 = vsyncpa [#allocation9], 0  ;;  %s3355_s13 = smov 0   ;;  %s3357_s14 = smov 0  }
   0x3   :  { %s3359_s15 = smov 0   ;;  %s3361_s16 = smov 0  }
   0x4 LB: > { %s3374_s17 = sadd.s32 4294967295, %s3288_s16   ;;  %p44_p0 = scmp.ne.s32.totalorder %s3280_s14, %s3276_s13  ;;  %s3288_s16 = sphi %s3361_s16, %s3885_s16   ;;  %s3284_s15 = sphi %s3359_s15, %s3884_s15   ;;  %s3280_s14 = sphi %s3357_s14, %s3883_s14   ;;  %s3276_s13 = sphi %s3355_s13, %s3882_s13  }
   0x5   : > { %p3871_p1 = scmp.eq.s32.totalorder %s3374_s17, 0  ;;  %p2475_p2 = scmp.ge.s32.totalorder %s3288_s16, 1 }
   0x6   : > { %p270_p3 = scmp.lt.s32.totalorder %s3288_s16, 3  ;;  %s3290_s20 = smov [#allocation8]  }
   0x7   : > { %p3382_p4 = por %p3871_p1, %p44_p0  ;;  %s291_s21 = sshll.u32 %s3290_s20, 4  ;;  %s292_s21 = int_to_ptr.vmem [resolvable:$true] %s291_s21 }
   0x8   : > { %p3386_p5 = pnand %p2475_p2, %p270_p3  ;;  %s3291_s23 = smov [#allocation10]  }
   0x9   : > { %s3874_s18 = scalar_select %p3382_p4, 1, 0 }
   0xa   : > { %s3875_s19 = scalar_select %p3386_p5, 1, 0 }
   0xb   : > { %p2975_p6 = pneg %p3386_p5  ;;  %s304_s24 = sshll.u32 %s3291_s23, 4  ;;  %s3398_s24 = int_to_ptr.vmem [resolvable:$true] %s304_s24 }
   0xc   : > { %s3164_s27 = scalar_lea.hbm %s3864_s4, 512 }
   0xd   : > { %p3394_p7 = pnand %p2975_p6, %p3871_p1  ;;  %p3165_p8 = scmp.ne.s32.totalorder %s3864_s4, %s3164_s27 }
   0xe   : > { %p3171_p12 = scmp.lt.u32.totalorder %s3164_s27, %s3864_s4 }
   0xf   : > { %p3166_p9 = pneg %p3394_p7 }
  0x11   : > { %p3167_p10 = pnand %p3166_p9, %p3165_p8 }
  0x13   : > { %p3168_p11 = pneg %p3167_p10 }
  0x15   : > { %p3173_p13 = pnand %p3171_p12, %p3168_p11 }
  0x17   : > { %3176 = shalt.err (!%p3173_p13)
}
  0x18   : > { %s3177_s12 = scalar_lea.vmem %s292_s21, 512  ;;  %p3185_p6 = scmp.lt.s32.totalorder %s292_s21, %s292_s21 }
  0x19   : > { %p3178_p0 = scmp.ne.s32.totalorder %s292_s21, %s3177_s12  ;;  %p3186_p1 = scmp.lt.s32.totalorder %s3177_s12, %s3177_s12 }
  0x1b   : > { %p3180_p2 = pnand %p3178_p0, %p3166_p9  ;;  %p3187_p4 = por %p3186_p1, %p3185_p6 }
  0x1d   : > { %p3181_p3 = pneg %p3180_p2 }
  0x1f   : > { %p3188_p5 = pnand %p3187_p4, %p3181_p3 }
  0x21   : > { %3191 = shalt.err (!%p3188_p5)
}
  0x22   : > { %s3292_s13 = smov 128   ;;  %s3293_s20 = smov 8  }
  0x23   : > { %2978 = dma.hbm_to_vmem [thread:$0]  (!%p3394_p7), %s3864_s4, 512, %s292_s21, [#allocation9], %s3292_s13, %s3292_s13, %s3293_s20  }
  0x24   : > { %s3192_s28 = scalar_lea.hbm %s3865_s5, 512 }
  0x25   : > { %p3193_p8 = scmp.ne.s32.totalorder %s3865_s5, %s3192_s28  ;;  %p3199_p5 = scmp.lt.u32.totalorder %s3192_s28, %s3865_s5 }
  0x27   : > { %p3195_p1 = pnand %p3193_p8, %p3166_p9 }
  0x29   : > { %p3196_p4 = pneg %p3195_p1 }
  0x2b   : > { %p3201_p10 = pnand %p3199_p5, %p3196_p4 }
  0x2d   : > { %3204 = shalt.err (!%p3201_p10)
}
  0x2e   : > { %s3205_s21 = scalar_lea.vmem %s3398_s24, 512  ;;  %p3213_p0 = scmp.lt.s32.totalorder %s3398_s24, %s3398_s24 }
  0x2f   : > { %p3206_p11 = scmp.ne.s32.totalorder %s3398_s24, %s3205_s21  ;;  %p3214_p2 = scmp.lt.s32.totalorder %s3205_s21, %s3205_s21 }
  0x31   : > { %p3208_p12 = pnand %p3206_p11, %p3166_p9  ;;  %p3215_p3 = por %p3214_p2, %p3213_p0 }
  0x33   : > { %p3209_p13 = pneg %p3208_p12 }
  0x35   : > { %p3216_p6 = pnand %p3215_p3, %p3209_p13 }
  0x37   : > { %3219 = shalt.err (!%p3216_p6)
}
  0x38   : > { %2981 = dma.hbm_to_vmem [thread:$0]  (!%p3394_p7), %s3865_s5, 512, %s3398_s24, [#allocation9], %s3292_s13, %s3292_s13, %s3293_s20  }
  0x39   : > { %s3448_s26 = sadd.s32 1, %s3288_s16   ;;  %s31_s27 = sadd.s32 1, %s3284_s15 }
  0x3a   : > { %s28_s22 = ssub.s32 %s3288_s16, %s3448_s26  ;;  %p38_p9 = scmp.ne.s32.totalorder %s3284_s15, %s3280_s14 }
  0x3b   : > { %p29_p8 = scmp.eq.s32.totalorder %s28_s22, 0  ;;  %p39_p1 = scmp.eq.s32.totalorder %s3288_s16, 0 }
  0x3c   : > { %p2988_p4 = scmp.lt.s32.totalorder %s3288_s16, 2  ;;  %s330_s28 = sand.u32 1, %s3284_s15  }
  0x3d   : > { %s3459_s29 = scalar_select %p29_p8, %s3284_s15, %s31_s27  }
  0x3e   : > { %p40_p5 = por %p39_p1, %p38_p9  ;;  %s2479_s30 = sshll.u32 %s330_s28, 3 }
  0x3f   : > { %s2480_s11 = sshll.u32 %s3288_s16, 7  ;;  %s334_s24 = scalar_lea.vmem [#allocation6], %s2479_s30 }
  0x40   : > { %s3465_s23 = scalar_lea.hbm %s3860_s0, %s2480_s11  ;;  %s341_s13 = sshll.u32 %s334_s24, 4  ;;  %s3471_s13 = int_to_ptr.vmem [resolvable:$true] %s341_s13 }
  0x41   : > { %p3467_p7 = pnand %p2988_p4, %p40_p5  ;;  %s331_s16 = scalar_lea.sflag [#allocation7], %s330_s28 }
  0x42   : > { %s3220_s25 = scalar_lea.hbm %s3465_s23, 128  ;;  %s3225_s30 = scalar_lea.hbm %s3860_s0, 256 }
  0x43   : > { %p3221_p10 = scmp.ne.s32.totalorder %s3465_s23, %s3220_s25  ;;  %p3222_p11 = pneg %p3467_p7 }
  0x44   : > { %p3226_p0 = scmp.lt.u32.totalorder %s3465_s23, %s3860_s0  ;;  %p3227_p2 = scmp.lt.u32.totalorder %s3225_s30, %s3220_s25 }
  0x45   : > { %p3223_p12 = pnand %p3222_p11, %p3221_p10  ;;  %p3229_p6 = scmp.lt.u32.totalorder %s3220_s25, %s3465_s23 }
  0x46   : > { %p3228_p3 = por %p3227_p2, %p3226_p0 }
  0x47   : > { %p3224_p13 = pneg %p3223_p12 }
  0x48   : > { %p3230_p9 = por %p3229_p6, %p3228_p3 }
  0x4a   : > { %p3231_p8 = pnand %p3230_p9, %p3224_p13 }
  0x4c   : > { %3234 = shalt.err (!%p3231_p8)
}
  0x4d   : > { %s3235_s28 = scalar_lea.vmem %s3471_s13, 128  ;;  %s3294_s21 = smov [#allocation6]  }
  0x4e   : > { %p3236_p1 = scmp.ne.s32.totalorder %s3471_s13, %s3235_s28  ;;  %s3240_s24 = sshll.u32 %s3294_s21, 4  ;;  %s3241_s24 = int_to_ptr.vmem [resolvable:$false] %s3240_s24 }
  0x4f   : > { %s3242_s27 = scalar_lea.vmem %s3241_s24, 256  ;;  %p3243_p10 = scmp.lt.s32.totalorder %s3471_s13, %s3241_s24 }
  0x50   : > { %p3238_p4 = pnand %p3236_p1, %p3222_p11  ;;  %p3244_p12 = scmp.lt.s32.totalorder %s3242_s27, %s3235_s28 }
  0x52   : > { %p3239_p5 = pneg %p3238_p4  ;;  %p3245_p0 = por %p3244_p12, %p3243_p10 }
  0x54   : > { %p3246_p2 = pnand %p3245_p0, %p3239_p5 }
  0x56   : > { %3249 = shalt.err (!%p3246_p2)
}
  0x57   : > { %2985 = dma.hbm_to_vmem [thread:$0]  (!%p3467_p7), %s3465_s23, 128, %s3471_s13, %s331_s16  }
  0x58   : > { %p3878_p13 = scmp.ne.s32.totalorder %s3875_s19, 0 }
  0x59   : > { %s352_s25 = sand.u32 (!%p3878_p13), 1, %s3280_s14   ;;  %p3879_p11 = scmp.ne.s32.totalorder (!%p3878_p13), %s3874_s18, 0 }
  0x5a   : > { %350 = sbr.rel (%p3878_p13) target bundleno = 6280 (0x1888), region = 60  ;;  %s3501_s22 = sshll.u32 (!%p3878_p13), %s352_s25, 3 }
  0x5b   : > { %s353_s30 = scalar_lea.sflag (!%p3878_p13), [#allocation7], %s352_s25  ;;  %s356_s11 = scalar_lea.vmem (!%p3878_p13), [#allocation6], %s3501_s22 }
  0x61   : > { %3267 = dma.done.wait (%p3879_p11), %s353_s30, 128  }
  0x62   : > { %3269 = vsyncadd (%p3879_p11), %s353_s30, 4294967168  ;;  %p3880_p3 = scmp.eq.s32.totalorder %s3374_s17, 0 }
  0x64   : > { %3271 = dma.done.wait (%p3880_p3), [#allocation9], 1024   ;;  %p3881_p7 = pmov %p3880_p3 }
  0x65   : > { %v3295_v0 = vmov 0.0|0.0   ;;  %vm3296_vm0 = vmmov 0   ;;  %v3297_v1 = vmov 0.0   ;;  %v405_v2 = vld [vmem:[%s3861_s1] sm:$0xff]  ;;  %v406_v3 = vld [vmem:[%s3861_s1 + $0x8] sm:$0xff]  ;;  %v491_v4 = vld [vmem:[#allocation8] sm:$0xff] }
  0x66   : > { %3273 = vsyncadd (%p3881_p7), [#allocation9], 4294966272  ;;  %2845 = vmatprep.subr.bf16.mxu0 %v3295_v0  ;;  %2851 = vmatprep.subr.bf16.mxu1 %v3295_v0  ;;  %v2846_v5 = vpack.c.bf16 %v406_v3, %v405_v2  ;;  %v492_v6 = vld [vmem:[#allocation8 + $0x8] sm:$0xff]  ;;  %v407_v7 = vld [vmem:[%s3861_s1 + $0x10] sm:$0xff]  ;;  %vm416_vm1 = vcmask 261120   ;;  %s3298_s16 = smov 64  }
  0x67   : > { %2633 = vmatprep.mubr.msk.f32.mxu0 %vm3296_vm0, %v3297_v1  ;;  %2644 = vmatprep.mubr.msk.f32.mxu1 %vm3296_vm0, %v3297_v1  ;;  %v408_v8 = vld [vmem:[%s3861_s1 + $0x18] sm:$0xff]  ;;  %v2852_v9 = vpack.c.bf16 %v492_v6, %v491_v4  ;;  %v493_v10 = vld [vmem:[#allocation8 + $0x10] sm:$0xff]  ;;  %v494_v11 = vld [vmem:[#allocation8 + $0x18] sm:$0xff]  ;;  %s3299_s12 = smov 32   ;;  %vm778_vm2 = vcmask 253952   ;;  %vm2377_vm3 = vcmask 31744  }
  0x68   : > { %2847 = vmatpush3.bf16.msra.mxu0 %v2846_v5  ;;  %v2849_v12 = vpack.c.bf16 %v408_v8, %v407_v7  ;;  %v2855_v13 = vpack.c.bf16 %v494_v11, %v493_v10  ;;  %v573_v14 = vld [vmem:[%s3862_s2] sm:$0xff]  ;;  %v574_v15 = vld [vmem:[%s3862_s2 + $0x8] sm:$0xff]  ;;  %v577_v16 = vld [vmem:[#allocation10] sm:$0xff]  ;;  %p400_p6 = scmp.lt.s32.totalorder %s3374_s17, 1 }
  0x69   : > { %2848 = vmatprep.subr.bf16.mxu0 %v3295_v0  ;;  %2853 = vmatpush3.bf16.msra.mxu1 %v2852_v9  ;;  %v578_v17 = vld [vmem:[#allocation10 + $0x8] sm:$0xff]  ;;  %v404_v18 = vld [vmem:[%s356_s11] sm:$0xff]  ;;  %v3540_v19 = vpack.c.bf16 %v574_v15, %v573_v14  ;;  %v575_v20 = vld [vmem:[%s3862_s2 + $0x10] sm:$0xff] }
  0x6a   : > { %2854 = vmatprep.subr.bf16.mxu1 %v3295_v0  ;;  %v576_v21 = vld [vmem:[%s3862_s2 + $0x18] sm:$0xff]  ;;  %v3549_v22 = vpack.c.bf16 %v578_v17, %v577_v16  ;;  %v579_v23 = vld [vmem:[#allocation10 + $0x10] sm:$0xff]  ;;  %v580_v24 = vld [vmem:[#allocation10 + $0x18] sm:$0xff]  ;;  %s3887_s17 = smov (!%p400_p6, %s3374_s17), 1 }
  0x6b   : > { %v3555_v25 = vpack.c.bf16 %v576_v21, %v575_v20  ;;  %v3559_v26 = vpack.c.bf16 %v580_v24, %v579_v23  ;;  %v2486_v27 = vld [vmem:[%s3863_s3] ss:$0 sm:$0xff] }
  0x6c   : > { %2850 = vmatpush3.bf16.msra.mxu0 %v2849_v12  ;;  %v2488_v28 = vld [vmem:[%s3866_s6] ss:$0 sm:$0xff] }
  0x6d   : > { %2856 = vmatpush3.bf16.msra.mxu1 %v2855_v13  ;;  %2857 = vmatprep.subr.bf16.mxu0 %v3295_v0 }
  0x6e   : > { %2863 = vmatprep.subr.bf16.mxu1 %v3295_v0 }
  0x6f   : > { %2634 = vmatmul.mubr.msk.f32.vlgmr.msra.gmra.mrb[0].mxu0 %vm416_vm1, %v404_v18 }
  0x70   : > { %2859 = vmatpush3.bf16.msra.mxu0 %v3540_v19  ;;  %2645 = vmatmul.mubr.msk.f32.vlgmr.msra.gmra.mrb[0].mxu1 %vm416_vm1, %v404_v18 }
  0x71   : > { %2860 = vmatprep.subr.bf16.mxu0 %v3295_v0  ;;  %2865 = vmatpush3.bf16.msra.mxu1 %v3549_v22 }
  0x72   : > { %2655 = vmatprep.mubr.msk.f32.mxu0 %vm3296_vm0, %v3297_v1  ;;  %2866 = vmatprep.subr.bf16.mxu1 %v3295_v0 }
  0x73   : > { %2666 = vmatprep.mubr.msk.f32.mxu1 %vm3296_vm0, %v3297_v1 }
  0x74   : > { %2862 = vmatpush3.bf16.msra.mxu0 %v3555_v25 }
  0x75   : > { %2868 = vmatpush3.bf16.msra.mxu1 %v3559_v26  ;;  %2869 = vmatprep.subr.bf16.mxu0 %v3295_v0 }
  0x76   : > { %2875 = vmatprep.subr.bf16.mxu1 %v3295_v0 }
  0x77   : > { %2656 = vmatmul.mubr.f32.vlgmr.msra.gmra.mrb[2].mxu0 %v3297_v1 }
  0x78   : > { %2667 = vmatmul.mubr.f32.vlgmr.msra.gmra.mrb[2].mxu1 %v3297_v1  ;;  %2871 = vmatpush3.bf16.msra.mxu0 %v3540_v19 }
  0x79   : > { %2872 = vmatprep.subr.bf16.mxu0 %v3295_v0  ;;  %2877 = vmatpush3.bf16.msra.mxu1 %v3549_v22 }
  0x7a   : > { %2677 = vmatprep.mubr.msk.f32.mxu0 %vm3296_vm0, %v3297_v1  ;;  %2878 = vmatprep.subr.bf16.mxu1 %v3295_v0 }
  0x7b   : > { %2688 = vmatprep.mubr.msk.f32.mxu1 %vm3296_vm0, %v3297_v1 }
  0x7c   : > { %2874 = vmatpush3.bf16.msra.mxu0 %v3555_v25 }
  0x7d   : > { %2880 = vmatpush3.bf16.msra.mxu1 %v3559_v26  ;;  %2881 = vmatprep.subr.bf16.mxu0 %v3295_v0 }
  0x7e   : > { %2887 = vmatprep.subr.bf16.mxu1 %v3295_v0 }
 0x142   : > { %v486_v29 = vpop.f32.mrb[0].mxu0 }
 0x143   : > { %v487_v30 = vadd.f32 %v2486_v27, %v486_v29  ;;  %v2635_v31 = vpop.f32.mrb[1].mxu0  ;;  %v568_v32 = vpop.f32.mrb[0].mxu1 }
 0x144   : > { %v569_v33 = vadd.f32 %v2488_v28, %v568_v32  ;;  %v2646_v34 = vpop.f32.mrb[1].mxu1 }
 0x145   : > { %490 = vst [vmem:[#allocation2] sm:$0xff] %v487_v30 }
 0x146   : > { %572 = vst [vmem:[#allocation3] sm:$0xff] %v569_v33 }
 0x14a   : > { %v651_v35 = vpop.f32.mrb[2].mxu0 }
 0x14b   : > { %v2657_v36 = vpop.f32.mrb[3].mxu0  ;;  %v722_v37 = vpop.f32.mrb[2].mxu1 }
 0x14c   : > { %v581_v38 = vld [vmem:[#allocation2] sm:$0x1]  ;;  %v2668_v39 = vpop.f32.mrb[3].mxu1  ;;  %v785_v9 = vld [vmem:[#allocation2 + $0x1] sm:$0x1] }
 0x14d   : > { %v652_v40 = vadd.f32 %v651_v35, %v581_v38  ;;  %v655_v41 = vld [vmem:[#allocation3 + $0x7] sm:$0x1]  ;;  %v858_v13 = vld [vmem:[#allocation3 + $0x6] sm:$0x1] }
 0x14e   : > { %v723_v42 = vadd.f32 %v722_v37, %v655_v41 }
 0x14f   : > { %3032 = vtanh.f32 %v652_v40  ;;  %v2490_v45 = vmul.f32 -1.442695, %v652_v40 }
 0x150   : > { %3034 = vtanh.f32 %v723_v42  ;;  %v2491_v46 = vmul.f32 -1.442695, %v723_v42 }
 0x151   : > { %3036 = vpow2.f32 %v2490_v45 }
 0x152   : > { %3038 = vpow2.f32 %v2491_v46 }
 0x159   : > { %v3033_v43 = vpop.eup %3032 }
 0x15a   : > { %735 = vrot.lane.b32.xlu0 %v3033_v43, %s3298_s16  ;;  %v3035_v44 = vpop.eup %3034 }
 0x15b   : > { %v3037_v47 = vpop.eup %3036 }
 0x15c   : > { %v729_v48 = vadd.f32 1.0, %v3037_v47  ;;  %v3039_v49 = vpop.eup %3038 }
 0x15d   : > { %v753_v50 = vadd.f32 1.0, %v3039_v49  ;;  %v989_v49 = vld [vmem:[#allocation2 + $0x2] sm:$0x1] }
 0x15e   : > { %759 = vrot.lane.b32.xlu0 %v3035_v44, %s3298_s16  ;;  %3040 = vrcp.f32 %v729_v48 }
 0x15f   : > { %3042 = vrcp.f32 %v753_v50 }
 0x168   : > { %v3041_v51 = vpop.eup %3040 }
 0x169   : > { %v3043_v54 = vpop.eup %3042  ;;  %v733_v57 = vmul.f32 0.0, %v3041_v51 }
 0x16a   : > { %v757_v60 = vmul.f32 0.0, %v3043_v54 }
 0x1cc   : > { %v736_v52 = vpop.permute.xlu0 %735 }
 0x1cd   : > { %v738_v53 = vmul.f32 %v3041_v51, %v736_v52 }
 0x1cf   : > { %740 = vrot.lane.b32.xlu1 %v738_v53, %s3299_s12  ;;  %v1062_v53 = vld [vmem:[#allocation3 + $0x5] sm:$0x1] }
 0x1d0   : > { %v760_v55 = vpop.permute.xlu0 %759 }
 0x1d1   : > { %v762_v56 = vmul.f32 %v3043_v54, %v760_v55 }
 0x1d3   : > { %764 = vrot.lane.b32.xlu1 %v762_v56, %s3299_s12 }
 0x241   : > { %v741_v58 = vpop.permute.xlu1 %740 }
 0x242   : > { %v3594_v59 = vadd.f32 %v741_v58, %v733_v57 }
 0x244   : > { %3044 = vtanh.f32 %v3594_v59 }
 0x245   : > { %v765_v61 = vpop.permute.xlu1 %764 }
 0x246   : > { %v3597_v62 = vadd.f32 %v765_v61, %v757_v60 }
 0x248   : > { %3046 = vtanh.f32 %v3597_v62 }
 0x24e   : > { %v3045_v63 = vpop.eup %3044 }
 0x24f   : > { %746 = vrot.lane.b32.xlu0 %v3045_v63, %s3298_s16 }
 0x252   : > { %v3047_v2 = vpop.eup %3046 }
 0x253   : > { %770 = vrot.lane.b32.xlu1 %v3047_v2, %s3298_s16 }
 0x2c1   : > { %v747_v3 = vpop.permute.xlu0 %746 }
 0x2c2   : > { %v749_v4 = vmul.f32 %v3041_v51, %v747_v3 }
 0x2c4   : > { %775 = vrot.lane.b32.xlu0 %v749_v4, %s3299_s12 }
 0x2c5   : > { %v771_v5 = vpop.permute.xlu1 %770 }
 0x2c6   : > { %v773_v6 = vmul.f32 %v3043_v54, %v771_v5 }
 0x2c8   : > { %781 = vrot.lane.b32.xlu1 %v773_v6, %s3299_s12 }
 0x336   : > { %v776_v7 = vpop.permute.xlu0 %775 }
 0x337   : > { %779 = vst.msk [vmem:[#allocation4] sm:$0x1] %vm778_vm2, %v776_v7  ;;  %2678 = vmatmul.mubr.msk.f32.vlgmr.msra.gmra.mrb[4].mxu0 %vm416_vm1, %v776_v7 }
 0x338   : > { %2883 = vmatpush3.bf16.msra.mxu0 %v3540_v19  ;;  %2699 = vmatprep.mubr.msk.f32.mxu0 %vm3296_vm0, %v3297_v1 }
 0x339   : > { %2884 = vmatprep.subr.bf16.mxu0 %v3295_v0 }
 0x33a   : > { %v782_v8 = vpop.permute.xlu1 %781 }
 0x33b   : > { %784 = vst.msk [vmem:[#allocation5 + $0x7] sm:$0x1] %vm778_vm2, %v782_v8  ;;  %2689 = vmatmul.mubr.msk.f32.vlgmr.msra.gmra.mrb[4].mxu1 %vm416_vm1, %v782_v8 }
 0x33c   : > { %2886 = vmatpush3.bf16.msra.mxu0 %v3555_v25  ;;  %2889 = vmatpush3.bf16.msra.mxu1 %v3549_v22 }
 0x33d   : > { %2890 = vmatprep.subr.bf16.mxu1 %v3295_v0  ;;  %2710 = vmatprep.mubr.msk.f32.mxu1 %vm3296_vm0, %v3297_v1 }
 0x33e   : > { %2893 = vmatprep.subr.bf16.mxu0 %v3295_v0 }
 0x340   : > { %2892 = vmatpush3.bf16.msra.mxu1 %v3559_v26 }
 0x341   : > { %2899 = vmatprep.subr.bf16.mxu1 %v3295_v0 }
 0x40a   : > { %v854_v10 = vpop.f32.mrb[4].mxu0 }
 0x40b   : > { %v855_v11 = vadd.f32 %v854_v10, %v785_v9  ;;  %v2679_v12 = vpop.f32.mrb[5].mxu0 }
 0x40d   : > { %3048 = vtanh.f32 %v855_v11  ;;  %v2494_v20 = vmul.f32 -1.442695, %v855_v11 }
 0x40e   : > { %v927_v14 = vpop.f32.mrb[4].mxu1 }
 0x40f   : > { %v928_v15 = vadd.f32 %v927_v14, %v858_v13  ;;  %v2690_v16 = vpop.f32.mrb[5].mxu1 }
 0x411   : > { %3050 = vtanh.f32 %v928_v15  ;;  %v2495_v21 = vmul.f32 -1.442695, %v928_v15 }
 0x412   : > { %3052 = vpow2.f32 %v2494_v20 }
 0x413   : > { %3054 = vpow2.f32 %v2495_v21 }
 0x417   : > { %v3049_v17 = vpop.eup %3048 }
 0x418   : > { %940 = vrot.lane.b32.xlu0 %v3049_v17, %s3298_s16 }
 0x41b   : > { %v3051_v18 = vpop.eup %3050 }
 0x41c   : > { %964 = vrot.lane.b32.xlu1 %v3051_v18, %s3298_s16  ;;  %v3053_v23 = vpop.eup %3052 }
 0x41d   : > { %v934_v24 = vadd.f32 1.0, %v3053_v23  ;;  %v3055_v27 = vpop.eup %3054 }
 0x41e   : > { %v958_v28 = vadd.f32 1.0, %v3055_v27  ;;  %v1193_v27 = vld [vmem:[#allocation2 + $0x3] sm:$0x1] }
 0x41f   : > { %3056 = vrcp.f32 %v934_v24 }
 0x420   : > { %3058 = vrcp.f32 %v958_v28 }
 0x429   : > { %v3057_v29 = vpop.eup %3056 }
 0x42a   : > { %v3059_v32 = vpop.eup %3058  ;;  %v938_v35 = vmul.f32 %v3057_v29, %v3594_v59 }
 0x42b   : > { %v962_v38 = vmul.f32 %v3059_v32, %v3597_v62 }
 0x48a   : > { %v941_v30 = vpop.permute.xlu0 %940 }
 0x48b   : > { %v943_v31 = vmul.f32 %v3057_v29, %v941_v30 }
 0x48d   : > { %945 = vrot.lane.b32.xlu0 %v943_v31, %s3299_s12  ;;  %v1266_v31 = vld [vmem:[#allocation3 + $0x4] sm:$0x1] }
 0x48e   : > { %v965_v33 = vpop.permute.xlu1 %964 }
 0x48f   : > { %v967_v34 = vmul.f32 %v3059_v32, %v965_v33 }
 0x491   : > { %969 = vrot.lane.b32.xlu1 %v967_v34, %s3299_s12 }
 0x4ff   : > { %v946_v36 = vpop.permute.xlu0 %945 }
 0x500   : > { %v3625_v37 = vadd.f32 %v946_v36, %v938_v35 }
 0x502   : > { %3060 = vtanh.f32 %v3625_v37 }
 0x503   : > { %v970_v39 = vpop.permute.xlu1 %969 }
 0x504   : > { %v3629_v40 = vadd.f32 %v970_v39, %v962_v38 }
 0x506   : > { %3062 = vtanh.f32 %v3629_v40 }
 0x50c   : > { %v3061_v41 = vpop.eup %3060 }
 0x50d   : > { %951 = vrot.lane.b32.xlu0 %v3061_v41, %s3298_s16 }
 0x510   : > { %v3063_v42 = vpop.eup %3062 }
 0x511   : > { %975 = vrot.lane.b32.xlu1 %v3063_v42, %s3298_s16 }
 0x57f   : > { %v952_v43 = vpop.permute.xlu0 %951 }
 0x580   : > { %v954_v44 = vmul.f32 %v3057_v29, %v952_v43 }
 0x582   : > { %980 = vrot.lane.b32.xlu0 %v954_v44, %s3299_s12 }
 0x583   : > { %v976_v45 = vpop.permute.xlu1 %975 }
 0x584   : > { %v978_v46 = vmul.f32 %v3059_v32, %v976_v45 }
 0x586   : > { %985 = vrot.lane.b32.xlu1 %v978_v46, %s3299_s12 }
 0x5f4   : > { %v981_v47 = vpop.permute.xlu0 %980 }
 0x5f5   : > { %983 = vst.msk [vmem:[#allocation4 + $0x1] sm:$0x1] %vm778_vm2, %v981_v47  ;;  %2700 = vmatmul.mubr.msk.f32.vlgmr.msra.gmra.mrb[6].mxu0 %vm416_vm1, %v981_v47 }
 0x5f6   : > { %2895 = vmatpush3.bf16.msra.mxu0 %v3540_v19  ;;  %2721 = vmatprep.mubr.msk.f32.mxu0 %vm3296_vm0, %v3297_v1 }
 0x5f7   : > { %2896 = vmatprep.subr.bf16.mxu0 %v3295_v0 }
 0x5f8   : > { %v986_v48 = vpop.permute.xlu1 %985 }
 0x5f9   : > { %988 = vst.msk [vmem:[#allocation5 + $0x6] sm:$0x1] %vm778_vm2, %v986_v48  ;;  %2711 = vmatmul.mubr.msk.f32.vlgmr.msra.gmra.mrb[6].mxu1 %vm416_vm1, %v986_v48 }
 0x5fa   : > { %2898 = vmatpush3.bf16.msra.mxu0 %v3555_v25  ;;  %2901 = vmatpush3.bf16.msra.mxu1 %v3549_v22 }
 0x5fb   : > { %2902 = vmatprep.subr.bf16.mxu1 %v3295_v0  ;;  %2732 = vmatprep.mubr.msk.f32.mxu1 %vm3296_vm0, %v3297_v1 }
 0x5fc   : > { %2905 = vmatprep.subr.bf16.mxu0 %v3295_v0 }
 0x5fe   : > { %2904 = vmatpush3.bf16.msra.mxu1 %v3559_v26 }
 0x5ff   : > { %2911 = vmatprep.subr.bf16.mxu1 %v3295_v0 }
 0x6c8   : > { %v1058_v50 = vpop.f32.mrb[6].mxu0 }
 0x6c9   : > { %v1059_v51 = vadd.f32 %v1058_v50, %v989_v49  ;;  %v2701_v52 = vpop.f32.mrb[7].mxu0 }
 0x6cb   : > { %3064 = vtanh.f32 %v1059_v51  ;;  %v2498_v59 = vmul.f32 -1.442695, %v1059_v51 }
 0x6cc   : > { %v1131_v54 = vpop.f32.mrb[6].mxu1 }
 0x6cd   : > { %v1132_v55 = vadd.f32 %v1131_v54, %v1062_v53  ;;  %v2712_v56 = vpop.f32.mrb[7].mxu1 }
 0x6cf   : > { %3066 = vtanh.f32 %v1132_v55  ;;  %v2499_v60 = vmul.f32 -1.442695, %v1132_v55 }
 0x6d0   : > { %3068 = vpow2.f32 %v2498_v59 }
 0x6d1   : > { %3070 = vpow2.f32 %v2499_v60 }
 0x6d5   : > { %v3065_v57 = vpop.eup %3064 }
 0x6d6   : > { %1144 = vrot.lane.b32.xlu0 %v3065_v57, %s3298_s16 }
 0x6d9   : > { %v3067_v58 = vpop.eup %3066 }
 0x6da   : > { %1168 = vrot.lane.b32.xlu1 %v3067_v58, %s3298_s16  ;;  %v3069_v61 = vpop.eup %3068 }
 0x6db   : > { %v1138_v62 = vadd.f32 1.0, %v3069_v61  ;;  %v3071_v63 = vpop.eup %3070 }
 0x6dc   : > { %v1162_v2 = vadd.f32 1.0, %v3071_v63  ;;  %v1397_v63 = vld [vmem:[#allocation2 + $0x4] sm:$0x1] }
 0x6dd   : > { %3072 = vrcp.f32 %v1138_v62 }
 0x6de   : > { %3074 = vrcp.f32 %v1162_v2 }
 0x6e7   : > { %v3073_v3 = vpop.eup %3072 }
 0x6e8   : > { %v3075_v6 = vpop.eup %3074  ;;  %v1142_v9 = vmul.f32 %v3073_v3, %v3625_v37 }
 0x6e9   : > { %v1166_v12 = vmul.f32 %v3075_v6, %v3629_v40 }
 0x748   : > { %v1145_v4 = vpop.permute.xlu0 %1144 }
 0x749   : > { %v1147_v5 = vmul.f32 %v3073_v3, %v1145_v4 }
 0x74b   : > { %1149 = vrot.lane.b32.xlu0 %v1147_v5, %s3299_s12  ;;  %v1470_v5 = vld [vmem:[#allocation3 + $0x3] sm:$0x1] }
 0x74c   : > { %v1169_v7 = vpop.permute.xlu1 %1168 }
 0x74d   : > { %v1171_v8 = vmul.f32 %v3075_v6, %v1169_v7 }
 0x74f   : > { %1173 = vrot.lane.b32.xlu1 %v1171_v8, %s3299_s12 }
 0x7bd   : > { %v1150_v10 = vpop.permute.xlu0 %1149 }
 0x7be   : > { %v3657_v11 = vadd.f32 %v1150_v10, %v1142_v9 }
 0x7c0   : > { %3076 = vtanh.f32 %v3657_v11 }
 0x7c1   : > { %v1174_v13 = vpop.permute.xlu1 %1173 }
 0x7c2   : > { %v3661_v14 = vadd.f32 %v1174_v13, %v1166_v12 }
 0x7c4   : > { %3078 = vtanh.f32 %v3661_v14 }
 0x7ca   : > { %v3077_v15 = vpop.eup %3076 }
 0x7cb   : > { %1155 = vrot.lane.b32.xlu0 %v3077_v15, %s3298_s16 }
 0x7ce   : > { %v3079_v16 = vpop.eup %3078 }
 0x7cf   : > { %1179 = vrot.lane.b32.xlu1 %v3079_v16, %s3298_s16 }
 0x83d   : > { %v1156_v17 = vpop.permute.xlu0 %1155 }
 0x83e   : > { %v1158_v18 = vmul.f32 %v3073_v3, %v1156_v17 }
 0x840   : > { %1184 = vrot.lane.b32.xlu0 %v1158_v18, %s3299_s12 }
 0x841   : > { %v1180_v20 = vpop.permute.xlu1 %1179 }
 0x842   : > { %v1182_v21 = vmul.f32 %v3075_v6, %v1180_v20 }
 0x844   : > { %1189 = vrot.lane.b32.xlu1 %v1182_v21, %s3299_s12 }
 0x8b2   : > { %v1185_v23 = vpop.permute.xlu0 %1184 }
 0x8b3   : > { %1187 = vst.msk [vmem:[#allocation4 + $0x2] sm:$0x1] %vm778_vm2, %v1185_v23  ;;  %2722 = vmatmul.mubr.msk.f32.vlgmr.msra.gmra.mrb[8].mxu0 %vm416_vm1, %v1185_v23 }
 0x8b4   : > { %2907 = vmatpush3.bf16.msra.mxu0 %v3540_v19  ;;  %2743 = vmatprep.mubr.msk.f32.mxu0 %vm3296_vm0, %v3297_v1 }
 0x8b5   : > { %2908 = vmatprep.subr.bf16.mxu0 %v3295_v0 }
 0x8b6   : > { %v1190_v24 = vpop.permute.xlu1 %1189 }
 0x8b7   : > { %1192 = vst.msk [vmem:[#allocation5 + $0x5] sm:$0x1] %vm778_vm2, %v1190_v24  ;;  %2733 = vmatmul.mubr.msk.f32.vlgmr.msra.gmra.mrb[8].mxu1 %vm416_vm1, %v1190_v24 }
 0x8b8   : > { %2910 = vmatpush3.bf16.msra.mxu0 %v3555_v25  ;;  %2913 = vmatpush3.bf16.msra.mxu1 %v3549_v22 }
 0x8b9   : > { %2914 = vmatprep.subr.bf16.mxu1 %v3295_v0  ;;  %2754 = vmatprep.mubr.msk.f32.mxu1 %vm3296_vm0, %v3297_v1 }
 0x8ba   : > { %2917 = vmatprep.subr.bf16.mxu0 %v3295_v0 }
 0x8bc   : > { %2916 = vmatpush3.bf16.msra.mxu1 %v3559_v26 }
 0x8bd   : > { %2923 = vmatprep.subr.bf16.mxu1 %v3295_v0 }
 0x986   : > { %v1262_v28 = vpop.f32.mrb[8].mxu0 }
 0x987   : > { %v1263_v29 = vadd.f32 %v1262_v28, %v1193_v27  ;;  %v2723_v30 = vpop.f32.mrb[9].mxu0 }
 0x989   : > { %3080 = vtanh.f32 %v1263_v29  ;;  %v2502_v37 = vmul.f32 -1.442695, %v1263_v29 }
 0x98a   : > { %v1335_v32 = vpop.f32.mrb[8].mxu1 }
 0x98b   : > { %v1336_v33 = vadd.f32 %v1335_v32, %v1266_v31  ;;  %v2734_v34 = vpop.f32.mrb[9].mxu1 }
 0x98d   : > { %3082 = vtanh.f32 %v1336_v33  ;;  %v2503_v38 = vmul.f32 -1.442695, %v1336_v33 }
 0x98e   : > { %3084 = vpow2.f32 %v2502_v37 }
 0x98f   : > { %3086 = vpow2.f32 %v2503_v38 }
 0x993   : > { %v3081_v35 = vpop.eup %3080 }
 0x994   : > { %1348 = vrot.lane.b32.xlu0 %v3081_v35, %s3298_s16 }
 0x997   : > { %v3083_v36 = vpop.eup %3082 }
 0x998   : > { %1372 = vrot.lane.b32.xlu1 %v3083_v36, %s3298_s16  ;;  %v3085_v39 = vpop.eup %3084 }
 0x999   : > { %v1342_v40 = vadd.f32 1.0, %v3085_v39  ;;  %v3087_v41 = vpop.eup %3086 }
 0x99a   : > { %v1366_v42 = vadd.f32 1.0, %v3087_v41  ;;  %v1601_v41 = vld [vmem:[#allocation2 + $0x5] sm:$0x1] }
 0x99b   : > { %3088 = vrcp.f32 %v1342_v40 }
 0x99c   : > { %3090 = vrcp.f32 %v1366_v42 }
 0x9a5   : > { %v3089_v43 = vpop.eup %3088 }
 0x9a6   : > { %v3091_v46 = vpop.eup %3090  ;;  %v1346_v49 = vmul.f32 %v3089_v43, %v3657_v11 }
 0x9a7   : > { %v1370_v52 = vmul.f32 %v3091_v46, %v3661_v14 }
 0xa06   : > { %v1349_v44 = vpop.permute.xlu0 %1348 }
 0xa07   : > { %v1351_v45 = vmul.f32 %v3089_v43, %v1349_v44 }
 0xa09   : > { %1353 = vrot.lane.b32.xlu0 %v1351_v45, %s3299_s12  ;;  %v1674_v45 = vld [vmem:[#allocation3 + $0x2] sm:$0x1] }
 0xa0a   : > { %v1373_v47 = vpop.permute.xlu1 %1372 }
 0xa0b   : > { %v1375_v48 = vmul.f32 %v3091_v46, %v1373_v47 }
 0xa0d   : > { %1377 = vrot.lane.b32.xlu1 %v1375_v48, %s3299_s12 }
 0xa7b   : > { %v1354_v50 = vpop.permute.xlu0 %1353 }
 0xa7c   : > { %v3689_v51 = vadd.f32 %v1354_v50, %v1346_v49 }
 0xa7e   : > { %3092 = vtanh.f32 %v3689_v51 }
 0xa7f   : > { %v1378_v53 = vpop.permute.xlu1 %1377 }
 0xa80   : > { %v3693_v54 = vadd.f32 %v1378_v53, %v1370_v52 }
 0xa82   : > { %3094 = vtanh.f32 %v3693_v54 }
 0xa88   : > { %v3093_v55 = vpop.eup %3092 }
 0xa89   : > { %1359 = vrot.lane.b32.xlu0 %v3093_v55, %s3298_s16 }
 0xa8c   : > { %v3095_v56 = vpop.eup %3094 }
 0xa8d   : > { %1383 = vrot.lane.b32.xlu1 %v3095_v56, %s3298_s16 }
 0xafb   : > { %v1360_v57 = vpop.permute.xlu0 %1359 }
 0xafc   : > { %v1362_v58 = vmul.f32 %v3089_v43, %v1360_v57 }
 0xafe   : > { %1388 = vrot.lane.b32.xlu0 %v1362_v58, %s3299_s12 }
 0xaff   : > { %v1384_v59 = vpop.permute.xlu1 %1383 }
 0xb00   : > { %v1386_v60 = vmul.f32 %v3091_v46, %v1384_v59 }
 0xb02   : > { %1393 = vrot.lane.b32.xlu1 %v1386_v60, %s3299_s12 }
 0xb70   : > { %v1389_v61 = vpop.permute.xlu0 %1388 }
 0xb71   : > { %1391 = vst.msk [vmem:[#allocation4 + $0x3] sm:$0x1] %vm778_vm2, %v1389_v61  ;;  %2744 = vmatmul.mubr.msk.f32.vlgmr.msra.gmra.mrb[10].mxu0 %vm416_vm1, %v1389_v61 }
 0xb72   : > { %2919 = vmatpush3.bf16.msra.mxu0 %v3540_v19  ;;  %2765 = vmatprep.mubr.msk.f32.mxu0 %vm3296_vm0, %v3297_v1 }
 0xb73   : > { %2920 = vmatprep.subr.bf16.mxu0 %v3295_v0 }
 0xb74   : > { %v1394_v62 = vpop.permute.xlu1 %1393 }
 0xb75   : > { %1396 = vst.msk [vmem:[#allocation5 + $0x4] sm:$0x1] %vm778_vm2, %v1394_v62  ;;  %2755 = vmatmul.mubr.msk.f32.vlgmr.msra.gmra.mrb[10].mxu1 %vm416_vm1, %v1394_v62 }
 0xb76   : > { %2922 = vmatpush3.bf16.msra.mxu0 %v3555_v25  ;;  %2925 = vmatpush3.bf16.msra.mxu1 %v3549_v22 }
 0xb77   : > { %2926 = vmatprep.subr.bf16.mxu1 %v3295_v0  ;;  %2776 = vmatprep.mubr.msk.f32.mxu1 %vm3296_vm0, %v3297_v1 }
 0xb78   : > { %2929 = vmatprep.subr.bf16.mxu0 %v3295_v0 }
 0xb7a   : > { %2928 = vmatpush3.bf16.msra.mxu1 %v3559_v26 }
 0xb7b   : > { %2935 = vmatprep.subr.bf16.mxu1 %v3295_v0 }
 0xc44   : > { %v1466_v2 = vpop.f32.mrb[10].mxu0 }
 0xc45   : > { %v1467_v3 = vadd.f32 %v1466_v2, %v1397_v63  ;;  %v2745_v4 = vpop.f32.mrb[11].mxu0 }
 0xc47   : > { %3096 = vtanh.f32 %v1467_v3  ;;  %v2506_v11 = vmul.f32 -1.442695, %v1467_v3 }
 0xc48   : > { %v1539_v6 = vpop.f32.mrb[10].mxu1 }
 0xc49   : > { %v1540_v7 = vadd.f32 %v1539_v6, %v1470_v5  ;;  %v2756_v8 = vpop.f32.mrb[11].mxu1 }
 0xc4b   : > { %3098 = vtanh.f32 %v1540_v7  ;;  %v2507_v12 = vmul.f32 -1.442695, %v1540_v7 }
 0xc4c   : > { %3100 = vpow2.f32 %v2506_v11 }
 0xc4d   : > { %3102 = vpow2.f32 %v2507_v12 }
 0xc51   : > { %v3097_v9 = vpop.eup %3096 }
 0xc52   : > { %1552 = vrot.lane.b32.xlu0 %v3097_v9, %s3298_s16 }
 0xc55   : > { %v3099_v10 = vpop.eup %3098 }
 0xc56   : > { %1576 = vrot.lane.b32.xlu1 %v3099_v10, %s3298_s16  ;;  %v3101_v13 = vpop.eup %3100 }
 0xc57   : > { %v1546_v14 = vadd.f32 1.0, %v3101_v13  ;;  %v3103_v15 = vpop.eup %3102 }
 0xc58   : > { %v1570_v16 = vadd.f32 1.0, %v3103_v15 }
 0xc59   : > { %3104 = vrcp.f32 %v1546_v14 }
 0xc5a   : > { %3106 = vrcp.f32 %v1570_v16 }
 0xc63   : > { %v3105_v17 = vpop.eup %3104 }
 0xc64   : > { %v3107_v21 = vpop.eup %3106  ;;  %v1550_v27 = vmul.f32 %v3105_v17, %v3689_v51 }
 0xc65   : > { %v1574_v30 = vmul.f32 %v3107_v21, %v3693_v54 }
 0xcc4   : > { %v1553_v18 = vpop.permute.xlu0 %1552 }
 0xcc5   : > { %v1555_v20 = vmul.f32 %v3105_v17, %v1553_v18  ;;  %v1878_v18 = vld [vmem:[#allocation3 + $0x1] sm:$0x1] }
 0xcc7   : > { %1557 = vrot.lane.b32.xlu0 %v1555_v20, %s3299_s12 }
 0xcc8   : > { %v1577_v23 = vpop.permute.xlu1 %1576 }
 0xcc9   : > { %v1579_v24 = vmul.f32 %v3107_v21, %v1577_v23 }
 0xccb   : > { %1581 = vrot.lane.b32.xlu1 %v1579_v24, %s3299_s12 }
 0xd39   : > { %v1558_v28 = vpop.permute.xlu0 %1557 }
 0xd3a   : > { %v3721_v29 = vadd.f32 %v1558_v28, %v1550_v27 }
 0xd3c   : > { %3108 = vtanh.f32 %v3721_v29 }
 0xd3d   : > { %v1582_v31 = vpop.permute.xlu1 %1581 }
 0xd3e   : > { %v3725_v32 = vadd.f32 %v1582_v31, %v1574_v30 }
 0xd40   : > { %3110 = vtanh.f32 %v3725_v32 }
 0xd46   : > { %v3109_v33 = vpop.eup %3108 }
 0xd47   : > { %1563 = vrot.lane.b32.xlu0 %v3109_v33, %s3298_s16 }
 0xd4a   : > { %v3111_v34 = vpop.eup %3110 }
 0xd4b   : > { %1587 = vrot.lane.b32.xlu1 %v3111_v34, %s3298_s16 }
 0xdb9   : > { %v1564_v35 = vpop.permute.xlu0 %1563 }
 0xdba   : > { %v1566_v36 = vmul.f32 %v3105_v17, %v1564_v35 }
 0xdbc   : > { %1592 = vrot.lane.b32.xlu0 %v1566_v36, %s3299_s12 }
 0xdbd   : > { %v1588_v37 = vpop.permute.xlu1 %1587 }
 0xdbe   : > { %v1590_v38 = vmul.f32 %v3107_v21, %v1588_v37 }
 0xdc0   : > { %1597 = vrot.lane.b32.xlu1 %v1590_v38, %s3299_s12 }
 0xe2e   : > { %v1593_v39 = vpop.permute.xlu0 %1592 }
 0xe2f   : > { %1595 = vst.msk [vmem:[#allocation4 + $0x4] sm:$0x1] %vm778_vm2, %v1593_v39  ;;  %2766 = vmatmul.mubr.msk.f32.vlgmr.msra.gmra.mrb[12].mxu0 %vm416_vm1, %v1593_v39 }
 0xe30   : > { %2931 = vmatpush3.bf16.msra.mxu0 %v3540_v19  ;;  %2787 = vmatprep.mubr.msk.f32.mxu0 %vm3296_vm0, %v3297_v1 }
 0xe31   : > { %2932 = vmatprep.subr.bf16.mxu0 %v3295_v0 }
 0xe32   : > { %v1598_v40 = vpop.permute.xlu1 %1597 }
 0xe33   : > { %1600 = vst.msk [vmem:[#allocation5 + $0x3] sm:$0x1] %vm778_vm2, %v1598_v40  ;;  %2777 = vmatmul.mubr.msk.f32.vlgmr.msra.gmra.mrb[12].mxu1 %vm416_vm1, %v1598_v40 }
 0xe34   : > { %2934 = vmatpush3.bf16.msra.mxu0 %v3555_v25  ;;  %2937 = vmatpush3.bf16.msra.mxu1 %v3549_v22 }
 0xe35   : > { %2938 = vmatprep.subr.bf16.mxu1 %v3295_v0  ;;  %2798 = vmatprep.mubr.msk.f32.mxu1 %vm3296_vm0, %v3297_v1 }
 0xe36   : > { %2941 = vmatprep.subr.bf16.mxu0 %v3295_v0 }
 0xe38   : > { %2940 = vmatpush3.bf16.msra.mxu1 %v3559_v26 }
 0xe39   : > { %2947 = vmatprep.subr.bf16.mxu1 %v3295_v0 }
 0xf02   : > { %v1670_v42 = vpop.f32.mrb[12].mxu0 }
 0xf03   : > { %v1671_v43 = vadd.f32 %v1670_v42, %v1601_v41  ;;  %v2767_v44 = vpop.f32.mrb[13].mxu0 }
 0xf05   : > { %3112 = vtanh.f32 %v1671_v43  ;;  %v2510_v51 = vmul.f32 -1.442695, %v1671_v43 }
 0xf06   : > { %v1743_v46 = vpop.f32.mrb[12].mxu1 }
 0xf07   : > { %v1744_v47 = vadd.f32 %v1743_v46, %v1674_v45  ;;  %v2778_v48 = vpop.f32.mrb[13].mxu1 }
 0xf09   : > { %3114 = vtanh.f32 %v1744_v47  ;;  %v2511_v52 = vmul.f32 -1.442695, %v1744_v47 }
 0xf0a   : > { %3116 = vpow2.f32 %v2510_v51  ;;  %v2009_v51 = vld [vmem:[#allocation2 + $0x7] sm:$0x1] }
 0xf0b   : > { %3118 = vpow2.f32 %v2511_v52 }
 0xf0f   : > { %v3113_v49 = vpop.eup %3112 }
 0xf10   : > { %1756 = vrot.lane.b32.xlu0 %v3113_v49, %s3298_s16 }
 0xf13   : > { %v3115_v50 = vpop.eup %3114 }
 0xf14   : > { %1780 = vrot.lane.b32.xlu1 %v3115_v50, %s3298_s16  ;;  %v3117_v53 = vpop.eup %3116 }
 0xf15   : > { %v1750_v54 = vadd.f32 1.0, %v3117_v53  ;;  %v3119_v55 = vpop.eup %3118 }
 0xf16   : > { %v1774_v56 = vadd.f32 1.0, %v3119_v55  ;;  %v2082_v55 = vld [vmem:[#allocation3] sm:$0x1] }
 0xf17   : > { %3120 = vrcp.f32 %v1750_v54 }
 0xf18   : > { %3122 = vrcp.f32 %v1774_v56 }
 0xf21   : > { %v3121_v57 = vpop.eup %3120 }
 0xf22   : > { %v3123_v60 = vpop.eup %3122  ;;  %v1754_v63 = vmul.f32 %v3121_v57, %v3721_v29 }
 0xf23   : > { %v1778_v4 = vmul.f32 %v3123_v60, %v3725_v32 }
 0xf82   : > { %v1757_v58 = vpop.permute.xlu0 %1756 }
 0xf83   : > { %v1759_v59 = vmul.f32 %v3121_v57, %v1757_v58 }
 0xf85   : > { %1761 = vrot.lane.b32.xlu0 %v1759_v59, %s3299_s12 }
 0xf86   : > { %v1781_v61 = vpop.permute.xlu1 %1780 }
 0xf87   : > { %v1783_v62 = vmul.f32 %v3123_v60, %v1781_v61 }
 0xf89   : > { %1785 = vrot.lane.b32.xlu1 %v1783_v62, %s3299_s12 }
 0xff7   : > { %v1762_v2 = vpop.permute.xlu0 %1761 }
 0xff8   : > { %v3753_v3 = vadd.f32 %v1762_v2, %v1754_v63 }
 0xffa   : > { %3124 = vtanh.f32 %v3753_v3 }
 0xffb   : > { %v1786_v5 = vpop.permute.xlu1 %1785 }
 0xffc   : > { %v3757_v6 = vadd.f32 %v1786_v5, %v1778_v4 }
 0xffe   : > { %3126 = vtanh.f32 %v3757_v6 }
0x1004   : > { %v3125_v7 = vpop.eup %3124 }
0x1005   : > { %1767 = vrot.lane.b32.xlu0 %v3125_v7, %s3298_s16 }
0x1008   : > { %v3127_v8 = vpop.eup %3126 }
0x1009   : > { %1791 = vrot.lane.b32.xlu1 %v3127_v8, %s3298_s16 }
0x1077   : > { %v1768_v9 = vpop.permute.xlu0 %1767 }
0x1078   : > { %v1770_v10 = vmul.f32 %v3121_v57, %v1768_v9 }
0x107a   : > { %1796 = vrot.lane.b32.xlu0 %v1770_v10, %s3299_s12 }
0x107b   : > { %v1792_v11 = vpop.permute.xlu1 %1791 }
0x107c   : > { %v1794_v12 = vmul.f32 %v3123_v60, %v1792_v11 }
0x107e   : > { %1801 = vrot.lane.b32.xlu1 %v1794_v12, %s3299_s12 }
0x10ec   : > { %v1797_v13 = vpop.permute.xlu0 %1796 }
0x10ed   : > { %1799 = vst.msk [vmem:[#allocation4 + $0x5] sm:$0x1] %vm778_vm2, %v1797_v13  ;;  %2788 = vmatmul.mubr.msk.f32.vlgmr.msra.gmra.mrb[14].mxu0 %vm416_vm1, %v1797_v13 }
0x10ee   : > { %2943 = vmatpush3.bf16.msra.mxu0 %v3540_v19  ;;  %2809 = vmatprep.mubr.msk.f32.mxu0 %vm3296_vm0, %v3297_v1  ;;  %v1805_v19 = vld [vmem:[#allocation2 + $0x6] sm:$0x1] }
0x10ef   : > { %2944 = vmatprep.subr.bf16.mxu0 %v3295_v0 }
0x10f0   : > { %v1802_v14 = vpop.permute.xlu1 %1801 }
0x10f1   : > { %1804 = vst.msk [vmem:[#allocation5 + $0x2] sm:$0x1] %vm778_vm2, %v1802_v14  ;;  %2799 = vmatmul.mubr.msk.f32.vlgmr.msra.gmra.mrb[14].mxu1 %vm416_vm1, %v1802_v14 }
0x10f2   : > { %2946 = vmatpush3.bf16.msra.mxu0 %v3555_v25  ;;  %2949 = vmatpush3.bf16.msra.mxu1 %v3549_v22 }
0x10f3   : > { %2950 = vmatprep.subr.bf16.mxu1 %v3295_v0  ;;  %2820 = vmatprep.mubr.msk.f32.mxu1 %vm3296_vm0, %v3297_v1 }
0x10f4   : > { %2953 = vmatprep.subr.bf16.mxu0 %v3295_v0 }
0x10f6   : > { %2952 = vmatpush3.bf16.msra.mxu1 %v3559_v26 }
0x10f7   : > { %2959 = vmatprep.subr.bf16.mxu1 %v3295_v0 }
0x11c0   : > { %v1874_v15 = vpop.f32.mrb[14].mxu0 }
0x11c1   : > { %v1875_v16 = vadd.f32 %v1874_v15, %v1805_v19  ;;  %v2789_v17 = vpop.f32.mrb[15].mxu0 }
0x11c2   : > { %v2214_v17 = vld [vmem:[%s3867_s7] sm:$0xff] }
0x11c3   : > { %3128 = vtanh.f32 %v1875_v16  ;;  %v2514_v24 = vmul.f32 -1.442695, %v1875_v16 }
0x11c4   : > { %v1947_v25 = vpop.f32.mrb[14].mxu1 }
0x11c5   : > { %v1948_v20 = vadd.f32 %v1947_v25, %v1878_v18  ;;  %v2800_v22 = vpop.f32.mrb[15].mxu1  ;;  %v2215_v18 = vld [vmem:[%s3867_s7 + $0x8] sm:$0xff] }
0x11c6   : > { %v2960_v25 = vpack.c.bf16 %v2215_v18, %v2214_v17  ;;  %v2220_v22 = vld [vmem:[%s3868_s8 + $0x8] sm:$0xff] }
0x11c7   : > { %3130 = vtanh.f32 %v1948_v20  ;;  %v2515_v26 = vmul.f32 -1.442695, %v1948_v20  ;;  %v2219_v20 = vld [vmem:[%s3868_s8] sm:$0xff] }
0x11c8   : > { %3132 = vpow2.f32 %v2514_v24  ;;  %v2217_v24 = vld [vmem:[%s3867_s7 + $0x18] sm:$0xff] }
0x11c9   : > { %3134 = vpow2.f32 %v2515_v26 }
0x11cd   : > { %v3129_v21 = vpop.eup %3128 }
0x11ce   : > { %1960 = vrot.lane.b32.xlu0 %v3129_v21, %s3298_s16  ;;  %v2216_v21 = vld [vmem:[%s3867_s7 + $0x10] sm:$0xff] }
0x11cf   : > { %v2963_v26 = vpack.c.bf16 %v2217_v24, %v2216_v21 }
0x11d1   : > { %v3131_v23 = vpop.eup %3130 }
0x11d2   : > { %1984 = vrot.lane.b32.xlu1 %v3131_v23, %s3298_s16  ;;  %v3133_v27 = vpop.eup %3132  ;;  %v2954_v23 = vpack.c.bf16 %v2220_v22, %v2219_v20 }
0x11d3   : > { %v1954_v28 = vadd.f32 1.0, %v3133_v27  ;;  %v3135_v29 = vpop.eup %3134  ;;  %v2221_v27 = vld [vmem:[%s3868_s8 + $0x10] sm:$0xff] }
0x11d4   : > { %v1978_v30 = vadd.f32 1.0, %v3135_v29 }
0x11d5   : > { %3136 = vrcp.f32 %v1954_v28  ;;  %v2222_v28 = vld [vmem:[%s3868_s8 + $0x18] sm:$0xff] }
0x11d6   : > { %3138 = vrcp.f32 %v1978_v30  ;;  %v2957_v29 = vpack.c.bf16 %v2222_v28, %v2221_v27 }
0x11df   : > { %v3137_v31 = vpop.eup %3136 }
0x11e0   : > { %v3139_v34 = vpop.eup %3138  ;;  %v1958_v37 = vmul.f32 %v3137_v31, %v3753_v3 }
0x11e1   : > { %v1982_v40 = vmul.f32 %v3139_v34, %v3757_v6 }
0x1240   : > { %v1961_v32 = vpop.permute.xlu0 %1960 }
0x1241   : > { %v1963_v33 = vmul.f32 %v3137_v31, %v1961_v32 }
0x1243   : > { %1965 = vrot.lane.b32.xlu0 %v1963_v33, %s3299_s12 }
0x1244   : > { %v1985_v35 = vpop.permute.xlu1 %1984 }
0x1245   : > { %v1987_v36 = vmul.f32 %v3139_v34, %v1985_v35 }
0x1247   : > { %1989 = vrot.lane.b32.xlu1 %v1987_v36, %s3299_s12 }
0x12b5   : > { %v1966_v38 = vpop.permute.xlu0 %1965 }
0x12b6   : > { %v1968_v39 = vadd.f32 %v1966_v38, %v1958_v37 }
0x12b8   : > { %3140 = vtanh.f32 %v1968_v39 }
0x12b9   : > { %v1990_v41 = vpop.permute.xlu1 %1989 }
0x12ba   : > { %v1992_v42 = vadd.f32 %v1990_v41, %v1982_v40  ;;  %v2522_v40 = vld [vmem:[%s3869_s9] ss:$0 sm:$0xff] }
0x12bc   : > { %3142 = vtanh.f32 %v1992_v42 }
0x12c2   : > { %v3141_v43 = vpop.eup %3140 }
0x12c3   : > { %1971 = vrot.lane.b32.xlu0 %v3141_v43, %s3298_s16 }
0x12c6   : > { %v3143_v44 = vpop.eup %3142 }
0x12c7   : > { %1995 = vrot.lane.b32.xlu1 %v3143_v44, %s3298_s16 }
0x1335   : > { %v1972_v45 = vpop.permute.xlu0 %1971 }
0x1336   : > { %v1974_v46 = vmul.f32 %v3137_v31, %v1972_v45 }
0x1338   : > { %2000 = vrot.lane.b32.xlu0 %v1974_v46, %s3299_s12 }
0x1339   : > { %v1996_v47 = vpop.permute.xlu1 %1995 }
0x133a   : > { %v1998_v48 = vmul.f32 %v3139_v34, %v1996_v47 }
0x133c   : > { %2005 = vrot.lane.b32.xlu1 %v1998_v48, %s3299_s12 }
0x13aa   : > { %v2001_v49 = vpop.permute.xlu0 %2000 }
0x13ab   : > { %2003 = vst.msk [vmem:[#allocation4 + $0x6] sm:$0x1] %vm778_vm2, %v2001_v49  ;;  %2810 = vmatmul.mubr.msk.f32.vlgmr.msra.gmra.mrb[16].mxu0 %vm416_vm1, %v2001_v49 }
0x13ac   : > { %2831 = vmatprep.mubr.msk.f32.mxu0 %vm3296_vm0, %v3297_v1  ;;  %2955 = vmatpush3.bf16.msra.mxu0 %v2954_v23 }
0x13ad   : > { %2956 = vmatprep.subr.bf16.mxu0 %v3295_v0 }
0x13ae   : > { %v2006_v50 = vpop.permute.xlu1 %2005 }
0x13af   : > { %2008 = vst.msk [vmem:[#allocation5 + $0x1] sm:$0x1] %vm778_vm2, %v2006_v50  ;;  %2821 = vmatmul.mubr.msk.f32.vlgmr.msra.gmra.mrb[16].mxu1 %vm416_vm1, %v2006_v50 }
0x13b0   : > { %2842 = vmatprep.mubr.msk.f32.mxu1 %vm3296_vm0, %v3297_v1  ;;  %2961 = vmatpush3.bf16.msra.mxu1 %v2960_v25 }
0x13b1   : > { %2962 = vmatprep.subr.bf16.mxu1 %v3295_v0  ;;  %2958 = vmatpush3.bf16.msra.mxu0 %v2957_v29 }
0x13b4   : > { %2964 = vmatpush3.bf16.msra.mxu1 %v2963_v26 }
0x147e   : > { %v2078_v52 = vpop.f32.mrb[16].mxu0 }
0x147f   : > { %v2079_v53 = vadd.f32 %v2078_v52, %v2009_v51  ;;  %v2811_v54 = vpop.f32.mrb[17].mxu0 }
0x1481   : > { %3144 = vtanh.f32 %v2079_v53  ;;  %v2518_v61 = vmul.f32 -1.442695, %v2079_v53 }
0x1482   : > { %v2151_v56 = vpop.f32.mrb[16].mxu1 }
0x1483   : > { %v2152_v57 = vadd.f32 %v2151_v56, %v2082_v55  ;;  %v2822_v58 = vpop.f32.mrb[17].mxu1 }
0x1485   : > { %3146 = vtanh.f32 %v2152_v57  ;;  %v2519_v62 = vmul.f32 -1.442695, %v2152_v57 }
0x1486   : > { %3148 = vpow2.f32 %v2518_v61 }
0x1487   : > { %3150 = vpow2.f32 %v2519_v62 }
0x148b   : > { %v3145_v59 = vpop.eup %3144 }
0x148c   : > { %2164 = vrot.lane.b32.xlu0 %v3145_v59, %s3298_s16 }
0x148f   : > { %v3147_v60 = vpop.eup %3146 }
0x1490   : > { %2188 = vrot.lane.b32.xlu1 %v3147_v60, %s3298_s16  ;;  %v3149_v1 = vpop.eup %3148 }
0x1491   : > { %v2158_v63 = vadd.f32 1.0, %v3149_v1  ;;  %v3151_v2 = vpop.eup %3150 }
0x1492   : > { %v2182_v3 = vadd.f32 1.0, %v3151_v2 }
0x1493   : > { %3152 = vrcp.f32 %v2158_v63 }
0x1494   : > { %3154 = vrcp.f32 %v2182_v3 }
0x149d   : > { %v3153_v4 = vpop.eup %3152 }
0x149e   : > { %v3155_v7 = vpop.eup %3154  ;;  %v2162_v10 = vmul.f32 %v3153_v4, %v1968_v39 }
0x149f   : > { %v2186_v13 = vmul.f32 %v3155_v7, %v1992_v42 }
0x14fe   : > { %v2165_v5 = vpop.permute.xlu0 %2164 }
0x14ff   : > { %v2167_v6 = vmul.f32 %v3153_v4, %v2165_v5 }
0x1501   : > { %2169 = vrot.lane.b32.xlu0 %v2167_v6, %s3299_s12 }
0x1502   : > { %v2189_v8 = vpop.permute.xlu1 %2188 }
0x1503   : > { %v2191_v9 = vmul.f32 %v3155_v7, %v2189_v8 }
0x1505   : > { %2193 = vrot.lane.b32.xlu1 %v2191_v9, %s3299_s12 }
0x1573   : > { %v2170_v11 = vpop.permute.xlu0 %2169 }
0x1574   : > { %v2172_v12 = vadd.f32 %v2170_v11, %v2162_v10 }
0x1576   : > { %3156 = vtanh.f32 %v2172_v12 }
0x1577   : > { %v2194_v14 = vpop.permute.xlu1 %2193 }
0x1578   : > { %v2196_v19 = vadd.f32 %v2194_v14, %v2186_v13 }
0x157a   : > { %3158 = vtanh.f32 %v2196_v19 }
0x1580   : > { %v3157_v15 = vpop.eup %3156 }
0x1581   : > { %2175 = vrot.lane.b32.xlu0 %v3157_v15, %s3298_s16 }
0x1584   : > { %v3159_v16 = vpop.eup %3158 }
0x1585   : > { %2199 = vrot.lane.b32.xlu1 %v3159_v16, %s3298_s16 }
0x15f3   : > { %v2176_v30 = vpop.permute.xlu0 %2175 }
0x15f4   : > { %v2178_v31 = vmul.f32 %v3153_v4, %v2176_v30 }
0x15f6   : > { %2204 = vrot.lane.b32.xlu0 %v2178_v31, %s3299_s12 }
0x15f7   : > { %v2200_v32 = vpop.permute.xlu1 %2199 }
0x15f8   : > { %v2202_v33 = vmul.f32 %v3155_v7, %v2200_v32 }
0x15fa   : > { %2209 = vrot.lane.b32.xlu1 %v2202_v33, %s3299_s12  ;;  %s2485_s12 = sshll.u32 %s3887_s17, 3 }
0x15fb   : > { %s403_s18 = scalar_lea.vmem %s3870_s10, %s2485_s12 }
0x1668   : > { %v2205_v34 = vpop.permute.xlu0 %2204 }
0x1669   : > { %2207 = vst.msk [vmem:[#allocation4 + $0x7] sm:$0x1] %vm778_vm2, %v2205_v34 }
0x166c   : > { %v2210_v0 = vpop.permute.xlu1 %2209 }
0x166d   : > { %2212 = vst.msk [vmem:[#allocation5] sm:$0x1] %vm778_vm2, %v2210_v0 }
0x1670   : > { %v2213_v35 = vld [vmem:[#allocation4] sm:$0xff] }
0x1671   : > { %2843 = vmatmul.mubr.msk.f32.vlgmr.msra.gmra.mrb[18].mxu1 %vm416_vm1, %v2213_v35 }
0x1674   : > { %v2218_v36 = vld [vmem:[#allocation5] sm:$0xff] }
0x1675   : > { %2832 = vmatmul.mubr.msk.f32.vlgmr.msra.gmra.mrb[18].mxu0 %vm416_vm1, %v2218_v36 }
0x1744   : > { %v2365_v37 = vpop.f32.mrb[18].mxu1 }
0x1745   : > { %v2844_v38 = vpop.f32.mrb[19].mxu1 }
0x1748   : > { %v2292_v39 = vpop.f32.mrb[18].mxu0 }
0x1749   : > { %v2366_v41 = vadd.f32 %v2365_v37, %v2292_v39  ;;  %v2833_v42 = vpop.f32.mrb[19].mxu0 }
0x174b   : > { %v2376_v43 = vadd.f32 %v2522_v40, %v2366_v41 }
0x174d   : > { %v2378_v44 = vsel %vm2377_vm3, %v2376_v43, -inf }
0x174e   : > { %2379 = vmax.xlane.f32.xlu0 %v2378_v44 }
0x17db   : > { %v2380_v45 = vpop.xlane.xlu0 %2379 }
0x17dc   : > { %v2381_v46 = vsub.f32 %v2376_v43, %v2380_v45 }
0x17de   : > { %v2382_v47 = vmul.f32 1.442695, %v2381_v46 }
0x17e0   : > { %3160 = vpow2.f32 %v2382_v47 }
0x17ea   : > { %v3161_v48 = vpop.eup %3160 }
0x17eb   : > { %v2384_v49 = vsel %vm2377_vm3, %v3161_v48, 0.0 }
0x17ec   : > { %2385 = vadd.xlane.f32.xlu1 %v2384_v49 }
0x1879   : > { %v2386_v50 = vpop.xlane.xlu1 %2385 }
0x187a   : > { %3162 = vrcp.f32 %v2386_v50 }
0x1884   : > { %v3163_v51 = vpop.eup %3162 }
0x1885   : > { %v2388_v52 = vmul.f32 %v3163_v51, %v3161_v48 }
0x1887   : > { %2389 = vst.msk [vmem:[%s403_s18] sm:$0xff] %vm2377_vm3, %v2388_v52 }
0x1888 PF: > { %p21_p9 = scmp.ge.s32.totalorder %s3448_s26, 4   ;;  %s3882_s13 = smov %s3280_s14 }
0x1889   : > { %s3883_s14 = smov %s3284_s15  ;;  %s3884_s15 = smov %s3459_s29 }
0x188a   : > { %s3885_s16 = smov %s3448_s26  ;;  %23 = sbr.rel (!%p21_p9) target bundleno = 4 (0x4), region = 108 }
0x1891   :  { %2409 = vsyncpa [#allocation7], 1 }
0x1892   :  { %2411 = vsyncpa [#allocation7 + $0x1], 1 }
0x1893   :  { %2412 = vsyncpa [#allocation9], 1 }

</bundles_post_ra>
